<compile_context>
chip_gen: v6e
topology: v6e:2x2x1
jax: 0.10.0
libtpu: 0.0.40
codegen_flags: <defaults>
</compile_context>

<pallas_src>
import jax
import jax.numpy as jnp
from jax.experimental import pallas as pl
from jax.experimental.pallas import tpu as pltpu

KERNEL_SIZE = 16
STRIDE = 2
BN_EPS = 1e-5
NUM_STAGES = 3


def _conv_out_len(l_in, k=KERNEL_SIZE, s=STRIDE):
    return (l_in - k) // s + 1


def _round_up(x, m):
    return (x + m - 1) // m * m


def _make_hhead_kernel(n_true, n_pad, l0p, l_outs):
    """Build the kernel closure. All arguments are static Python ints / tuples."""

    def kernel(x_ref, taps_ref, bnp_ref, o_ref):
        # x_ref: (n_pad, l0p) VMEM; taps_ref: (48,) SMEM; bnp_ref: (6,) SMEM;
        # o_ref: (n_pad, l0p) VMEM (full-resolution slab, valid samples at stride 8).

        # --- Hoist every scalar SMEM read to the top (scalar slots run ahead). ---
        taps = [taps_ref[i] for i in range(NUM_STAGES * KERNEL_SIZE)]
        gammas = [bnp_ref[2 * i] for i in range(NUM_STAGES)]
        betas = [bnp_ref[2 * i + 1] for i in range(NUM_STAGES)]

        # --- Hoisted iotas / masks reused by every stage. ---
        lane = jax.lax.broadcasted_iota(jnp.int32, (n_pad, l0p), 1)
        if n_pad != n_true:
            row_ok = jax.lax.broadcasted_iota(jnp.int32, (n_pad, l0p), 0) < n_true
        else:
            row_ok = None  # no padded rows -> no row mask needed

        def stage(h, idx, dilation, l_out):
            # 16-tap dilated conv on the full-resolution lattice:
            #   z[:, u] = sum_j w[j] * h[:, u + dilation*j]
            # accumulated as 4 round-robin chains + a pairwise tree.
            w = taps[KERNEL_SIZE * idx: KERNEL_SIZE * (idx + 1)]

            def tap(j):
                if j == 0:
                    return w[0] * h
                d = dilation * j
                # shifted[:, u] = h[:, (u + d) mod l0p]; wrapped lanes never feed
                # a valid output position (max valid access index is l0_true-1).
                return w[j] * pltpu.roll(h, (l0p - d) % l0p, 1)

            acc = [tap(j) for j in range(4)]
            for j in range(4, KERNEL_SIZE):
                acc[j % 4] = acc[j % 4] + tap(j)
            z = (acc[0] + acc[1]) + (acc[2] + acc[3])

            # Fused training-mode BatchNorm1d(1): biased batch stats over the
            # l_out valid strided lattice points of the n_true real rows only,
            # folded into a single scale/shift.  (One-pass E[z^2]-E[z]^2; fine
            # in f32 for activation-scale data, avoids a second full-array pass.)
            step = dilation * STRIDE                      # 2 ** (idx + 1)
            valid = ((lane & (step - 1)) == 0) & (lane <= step * (l_out - 1))
            if row_ok is not None:
                valid = valid & row_ok
            zm = jnp.where(valid, z, 0.0)                 # built once, reused
            inv_cnt = 1.0 / float(n_true * l_out)
            s = jnp.sum(zm)
            ss = jnp.sum(zm * zm)
            mean = s * inv_cnt
            var = ss * inv_cnt - mean * mean
            scale = gammas[idx] * jax.lax.rsqrt(var + BN_EPS)
            shift = betas[idx] - mean * scale
            return jnp.maximum(z * scale + shift, 0.0)    # ReLU

        h = x_ref[...]
        dil = 1
        for i, l_out in enumerate(l_outs):
            h = stage(h, i, dil, l_out)
            dil *= STRIDE
        o_ref[...] = h

    return kernel


@jax.jit
def hhead_forward(x_ncl, conv_ws, conv_bs, bn_gammas, bn_betas):
    """x_ncl: (N, 1, L) float32. Returns (N, 1, L_out) float32."""
    del conv_bs  # exactly cancelled by training-mode BN mean subtraction
    n, c, l0 = x_ncl.shape
    assert c == 1
    l1 = _conv_out_len(l0)
    l2 = _conv_out_len(l1)
    l3 = _conv_out_len(l2)
    # Fail loudly on inputs too short for 3 stride-2 k=16 convs (also guarantees
    # the roll wrap-around never reaches a valid output position).
    assert l1 >= 1 and l2 >= 1 and l3 >= 1, (l0, l1, l2, l3)

    l0p = _round_up(l0, 128)          # lane-dense length
    n_pad = _round_up(n, 8)           # full f32 sublane tiles

    x2d = x_ncl.reshape(n, l0).astype(jnp.float32)
    if (n_pad, l0p) != (n, l0):
        x2d = jnp.pad(x2d, ((0, n_pad - n), (0, l0p - l0)))

    # Flat 1-D scalar inputs (avoid 2-D SMEM padding).
    taps = jnp.concatenate(
        [jnp.asarray(w, jnp.float32).reshape(-1) for w in conv_ws]
    )  # (48,)
    bnp = jnp.stack(
        [jnp.asarray(v, jnp.float32).reshape(())
         for i in range(NUM_STAGES) for v in (bn_gammas[i], bn_betas[i])]
    )  # (6,)

    kernel = _make_hhead_kernel(n, n_pad, l0p, (l1, l2, l3))

    # VMEM budget: input + output slabs plus roll/FMA temporaries, with headroom,
    # capped well below v7x's 64 MiB physical VMEM.
    slab_bytes = n_pad * l0p * 4
    vmem_limit = int(min(48 * 2**20, max(16 * 2**20, 24 * slab_bytes)))
    flops = (NUM_STAGES * KERNEL_SIZE * 2 + 8) * n_pad * l0p   # conv FMAs + BN/ReLU
    cost = pl.CostEstimate(
        flops=int(flops),
        transcendentals=NUM_STAGES,                 # one rsqrt per stage
        bytes_accessed=int(2 * slab_bytes + (taps.size + bnp.size) * 4),
    )

    out_full = pl.pallas_call(
        kernel,
        out_shape=jax.ShapeDtypeStruct((n_pad, l0p), jnp.float32),
        in_specs=[
            pl.BlockSpec(memory_space=pltpu.MemorySpace.VMEM),   # x (lane-dense)
            pl.BlockSpec(memory_space=pltpu.MemorySpace.SMEM),   # 3x16 conv taps
            pl.BlockSpec(memory_space=pltpu.MemorySpace.SMEM),   # 3x{gamma,beta}
        ],
        out_specs=pl.BlockSpec(memory_space=pltpu.MemorySpace.VMEM),
        compiler_params=pltpu.CompilerParams(vmem_limit_bytes=vmem_limit),
        cost_estimate=cost,
    )(x2d, taps, bnp)

    # Gather the stride-8 valid lattice points of the real rows (layout plumbing
    # only; keeps the in-kernel store full-width / unmasked).
    out2d = jax.lax.slice(
        out_full, (0, 0), (n, STRIDE ** 3 * (l3 - 1) + 1), (1, STRIDE ** 3)
    )
    return out2d.reshape(n, 1, l3)


def _reference_forward(x_ncl, conv_ws, conv_bs, bn_gammas, bn_betas):
    """Pure-JAX reference with an explicit sliding-window conv (for validation)."""
    h = x_ncl[:, 0, :]  # (N, L)
    for i in range(NUM_STAGES):
        l_in = h.shape[1]
        l_out = _conv_out_len(l_in)
        acc = jnp.zeros((h.shape[0], l_out), jnp.float32)
        for j in range(KERNEL_SIZE):
            acc = acc + conv_ws[i][j] * jax.lax.slice(
                h, (0, j), (h.shape[0], j + STRIDE * (l_out - 1) + 1), (1, STRIDE)
            )
        acc = acc + conv_bs[i]
        mean = jnp.mean(acc)
        var = jnp.mean((acc - mean) ** 2)
        acc = (acc - mean) / jnp.sqrt(var + BN_EPS)
        acc = acc * bn_gammas[i] + bn_betas[i]
        h = jnp.maximum(acc, 0.0)
    return h[:, None, :]


if __name__ == "__main__":
    key = jax.random.PRNGKey(0)
    n, l0 = 8, 256  # small NCL input: (8, 1, 256)
    k_x, *k_ws = jax.random.split(key, 1 + NUM_STAGES)

    x = jax.random.normal(k_x, (n, 1, l0), dtype=jnp.float32)

    # Deterministic parameter init (mimics PyTorch's U(-sqrt(1/fan_in), sqrt(1/fan_in))).
    bound = 1.0 / jnp.sqrt(1.0 * KERNEL_SIZE)
    conv_ws, conv_bs, bn_gammas, bn_betas = [], [], [], []
    for i in range(NUM_STAGES):
        kw, kb = jax.random.split(k_ws[i])
        conv_ws.append(jax.random.uniform(kw, (KERNEL_SIZE,), jnp.float32, -bound, bound))
        conv_bs.append(jax.random.uniform(kb, (), jnp.float32, -bound, bound))
        bn_gammas.append(jnp.float32(1.0))  # BatchNorm1d default weight
        bn_betas.append(jnp.float32(0.0))   # BatchNorm1d default bias

    out = hhead_forward(x, conv_ws, conv_bs, bn_gammas, bn_betas)
    out = jax.block_until_ready(out)

    ref = _reference_forward(x, conv_ws, conv_bs, bn_gammas, bn_betas)
    assert out.shape == ref.shape, (out.shape, ref.shape)
    import numpy as np
    np.testing.assert_allclose(np.asarray(out), np.asarray(ref), rtol=1e-4, atol=1e-4)

    print("KERNEL_OK")
</pallas_src>

<mosaic_0001>
module attributes {stable_mosaic.version = 11 : i64} {
  func.func @kernel(%arg0: memref<8x256xf32, #tpu.memory_space<vmem>>, %arg1: memref<48xf32, #tpu.memory_space<smem>>, %arg2: memref<6xf32, #tpu.memory_space<smem>>, %arg3: memref<8x256xf32, #tpu.memory_space<vmem>>) attributes {dimension_semantics = [], scalar_prefetch = 0 : i64, scratch_operands = 0 : i64, tpu.core_type = #tpu.core_type<tc>} {
    %c0 = arith.constant 0 : index
    %0 = memref.load %arg1[%c0] : memref<48xf32, #tpu.memory_space<smem>>
    %c1 = arith.constant 1 : index
    %1 = memref.load %arg1[%c1] : memref<48xf32, #tpu.memory_space<smem>>
    %c2 = arith.constant 2 : index
    %2 = memref.load %arg1[%c2] : memref<48xf32, #tpu.memory_space<smem>>
    %c3 = arith.constant 3 : index
    %3 = memref.load %arg1[%c3] : memref<48xf32, #tpu.memory_space<smem>>
    %c4 = arith.constant 4 : index
    %4 = memref.load %arg1[%c4] : memref<48xf32, #tpu.memory_space<smem>>
    %c5 = arith.constant 5 : index
    %5 = memref.load %arg1[%c5] : memref<48xf32, #tpu.memory_space<smem>>
    %c6 = arith.constant 6 : index
    %6 = memref.load %arg1[%c6] : memref<48xf32, #tpu.memory_space<smem>>
    %c7 = arith.constant 7 : index
    %7 = memref.load %arg1[%c7] : memref<48xf32, #tpu.memory_space<smem>>
    %c8 = arith.constant 8 : index
    %8 = memref.load %arg1[%c8] : memref<48xf32, #tpu.memory_space<smem>>
    %c9 = arith.constant 9 : index
    %9 = memref.load %arg1[%c9] : memref<48xf32, #tpu.memory_space<smem>>
    %c10 = arith.constant 10 : index
    %10 = memref.load %arg1[%c10] : memref<48xf32, #tpu.memory_space<smem>>
    %c11 = arith.constant 11 : index
    %11 = memref.load %arg1[%c11] : memref<48xf32, #tpu.memory_space<smem>>
    %c12 = arith.constant 12 : index
    %12 = memref.load %arg1[%c12] : memref<48xf32, #tpu.memory_space<smem>>
    %c13 = arith.constant 13 : index
    %13 = memref.load %arg1[%c13] : memref<48xf32, #tpu.memory_space<smem>>
    %c14 = arith.constant 14 : index
    %14 = memref.load %arg1[%c14] : memref<48xf32, #tpu.memory_space<smem>>
    %c15 = arith.constant 15 : index
    %15 = memref.load %arg1[%c15] : memref<48xf32, #tpu.memory_space<smem>>
    %c16 = arith.constant 16 : index
    %16 = memref.load %arg1[%c16] : memref<48xf32, #tpu.memory_space<smem>>
    %c17 = arith.constant 17 : index
    %17 = memref.load %arg1[%c17] : memref<48xf32, #tpu.memory_space<smem>>
    %c18 = arith.constant 18 : index
    %18 = memref.load %arg1[%c18] : memref<48xf32, #tpu.memory_space<smem>>
    %c19 = arith.constant 19 : index
    %19 = memref.load %arg1[%c19] : memref<48xf32, #tpu.memory_space<smem>>
    %c20 = arith.constant 20 : index
    %20 = memref.load %arg1[%c20] : memref<48xf32, #tpu.memory_space<smem>>
    %c21 = arith.constant 21 : index
    %21 = memref.load %arg1[%c21] : memref<48xf32, #tpu.memory_space<smem>>
    %c22 = arith.constant 22 : index
    %22 = memref.load %arg1[%c22] : memref<48xf32, #tpu.memory_space<smem>>
    %c23 = arith.constant 23 : index
    %23 = memref.load %arg1[%c23] : memref<48xf32, #tpu.memory_space<smem>>
    %c24 = arith.constant 24 : index
    %24 = memref.load %arg1[%c24] : memref<48xf32, #tpu.memory_space<smem>>
    %c25 = arith.constant 25 : index
    %25 = memref.load %arg1[%c25] : memref<48xf32, #tpu.memory_space<smem>>
    %c26 = arith.constant 26 : index
    %26 = memref.load %arg1[%c26] : memref<48xf32, #tpu.memory_space<smem>>
    %c27 = arith.constant 27 : index
    %27 = memref.load %arg1[%c27] : memref<48xf32, #tpu.memory_space<smem>>
    %c28 = arith.constant 28 : index
    %28 = memref.load %arg1[%c28] : memref<48xf32, #tpu.memory_space<smem>>
    %c29 = arith.constant 29 : index
    %29 = memref.load %arg1[%c29] : memref<48xf32, #tpu.memory_space<smem>>
    %c30 = arith.constant 30 : index
    %30 = memref.load %arg1[%c30] : memref<48xf32, #tpu.memory_space<smem>>
    %c31 = arith.constant 31 : index
    %31 = memref.load %arg1[%c31] : memref<48xf32, #tpu.memory_space<smem>>
    %c32 = arith.constant 32 : index
    %32 = memref.load %arg1[%c32] : memref<48xf32, #tpu.memory_space<smem>>
    %c33 = arith.constant 33 : index
    %33 = memref.load %arg1[%c33] : memref<48xf32, #tpu.memory_space<smem>>
    %c34 = arith.constant 34 : index
    %34 = memref.load %arg1[%c34] : memref<48xf32, #tpu.memory_space<smem>>
    %c35 = arith.constant 35 : index
    %35 = memref.load %arg1[%c35] : memref<48xf32, #tpu.memory_space<smem>>
    %c36 = arith.constant 36 : index
    %36 = memref.load %arg1[%c36] : memref<48xf32, #tpu.memory_space<smem>>
    %c37 = arith.constant 37 : index
    %37 = memref.load %arg1[%c37] : memref<48xf32, #tpu.memory_space<smem>>
    %c38 = arith.constant 38 : index
    %38 = memref.load %arg1[%c38] : memref<48xf32, #tpu.memory_space<smem>>
    %c39 = arith.constant 39 : index
    %39 = memref.load %arg1[%c39] : memref<48xf32, #tpu.memory_space<smem>>
    %c40 = arith.constant 40 : index
    %40 = memref.load %arg1[%c40] : memref<48xf32, #tpu.memory_space<smem>>
    %c41 = arith.constant 41 : index
    %41 = memref.load %arg1[%c41] : memref<48xf32, #tpu.memory_space<smem>>
    %c42 = arith.constant 42 : index
    %42 = memref.load %arg1[%c42] : memref<48xf32, #tpu.memory_space<smem>>
    %c43 = arith.constant 43 : index
    %43 = memref.load %arg1[%c43] : memref<48xf32, #tpu.memory_space<smem>>
    %c44 = arith.constant 44 : index
    %44 = memref.load %arg1[%c44] : memref<48xf32, #tpu.memory_space<smem>>
    %c45 = arith.constant 45 : index
    %45 = memref.load %arg1[%c45] : memref<48xf32, #tpu.memory_space<smem>>
    %c46 = arith.constant 46 : index
    %46 = memref.load %arg1[%c46] : memref<48xf32, #tpu.memory_space<smem>>
    %c47 = arith.constant 47 : index
    %47 = memref.load %arg1[%c47] : memref<48xf32, #tpu.memory_space<smem>>
    %c0_0 = arith.constant 0 : index
    %48 = memref.load %arg2[%c0_0] : memref<6xf32, #tpu.memory_space<smem>>
    %c2_1 = arith.constant 2 : index
    %49 = memref.load %arg2[%c2_1] : memref<6xf32, #tpu.memory_space<smem>>
    %c4_2 = arith.constant 4 : index
    %50 = memref.load %arg2[%c4_2] : memref<6xf32, #tpu.memory_space<smem>>
    %c1_3 = arith.constant 1 : index
    %51 = memref.load %arg2[%c1_3] : memref<6xf32, #tpu.memory_space<smem>>
    %c3_4 = arith.constant 3 : index
    %52 = memref.load %arg2[%c3_4] : memref<6xf32, #tpu.memory_space<smem>>
    %c5_5 = arith.constant 5 : index
    %53 = memref.load %arg2[%c5_5] : memref<6xf32, #tpu.memory_space<smem>>
    %54 = tpu.iota {dimensions = array<i32: 1>} : vector<8x256xi32>
    %c0_6 = arith.constant 0 : index
    %c0_7 = arith.constant 0 : index
    %55 = vector.load %arg0[%c0_6, %c0_7] : memref<8x256xf32, #tpu.memory_space<vmem>>, vector<8x256xf32>
    %56 = vector.broadcast %0 : f32 to vector<8x256xf32>
    %57 = arith.mulf %56, %55 : vector<8x256xf32>
    %c255_i32 = arith.constant 255 : i32
    %58 = tpu.dynamic_rotate %55 by %c255_i32 dim 1 : vector<8x256xf32>, i32 -> vector<8x256xf32>
    %59 = vector.broadcast %1 : f32 to vector<8x256xf32>
    %60 = arith.mulf %59, %58 : vector<8x256xf32>
    %c254_i32 = arith.constant 254 : i32
    %61 = tpu.dynamic_rotate %55 by %c254_i32 dim 1 : vector<8x256xf32>, i32 -> vector<8x256xf32>
    %62 = vector.broadcast %2 : f32 to vector<8x256xf32>
    %63 = arith.mulf %62, %61 : vector<8x256xf32>
    %c253_i32 = arith.constant 253 : i32
    %64 = tpu.dynamic_rotate %55 by %c253_i32 dim 1 : vector<8x256xf32>, i32 -> vector<8x256xf32>
    %65 = vector.broadcast %3 : f32 to vector<8x256xf32>
    %66 = arith.mulf %65, %64 : vector<8x256xf32>
    %c252_i32 = arith.constant 252 : i32
    %67 = tpu.dynamic_rotate %55 by %c252_i32 dim 1 : vector<8x256xf32>, i32 -> vector<8x256xf32>
    %68 = vector.broadcast %4 : f32 to vector<8x256xf32>
    %69 = arith.mulf %68, %67 : vector<8x256xf32>
    %70 = arith.addf %57, %69 : vector<8x256xf32>
    %c251_i32 = arith.constant 251 : i32
    %71 = tpu.dynamic_rotate %55 by %c251_i32 dim 1 : vector<8x256xf32>, i32 -> vector<8x256xf32>
    %72 = vector.broadcast %5 : f32 to vector<8x256xf32>
    %73 = arith.mulf %72, %71 : vector<8x256xf32>
    %74 = arith.addf %60, %73 : vector<8x256xf32>
    %c250_i32 = arith.constant 250 : i32
    %75 = tpu.dynamic_rotate %55 by %c250_i32 dim 1 : vector<8x256xf32>, i32 -> vector<8x256xf32>
    %76 = vector.broadcast %6 : f32 to vector<8x256xf32>
    %77 = arith.mulf %76, %75 : vector<8x256xf32>
    %78 = arith.addf %63, %77 : vector<8x256xf32>
    %c249_i32 = arith.constant 249 : i32
    %79 = tpu.dynamic_rotate %55 by %c249_i32 dim 1 : vector<8x256xf32>, i32 -> vector<8x256xf32>
    %80 = vector.broadcast %7 : f32 to vector<8x256xf32>
    %81 = arith.mulf %80, %79 : vector<8x256xf32>
    %82 = arith.addf %66, %81 : vector<8x256xf32>
    %c248_i32 = arith.constant 248 : i32
    %83 = tpu.dynamic_rotate %55 by %c248_i32 dim 1 : vector<8x256xf32>, i32 -> vector<8x256xf32>
    %84 = vector.broadcast %8 : f32 to vector<8x256xf32>
    %85 = arith.mulf %84, %83 : vector<8x256xf32>
    %86 = arith.addf %70, %85 : vector<8x256xf32>
    %c247_i32 = arith.constant 247 : i32
    %87 = tpu.dynamic_rotate %55 by %c247_i32 dim 1 : vector<8x256xf32>, i32 -> vector<8x256xf32>
    %88 = vector.broadcast %9 : f32 to vector<8x256xf32>
    %89 = arith.mulf %88, %87 : vector<8x256xf32>
    %90 = arith.addf %74, %89 : vector<8x256xf32>
    %c246_i32 = arith.constant 246 : i32
    %91 = tpu.dynamic_rotate %55 by %c246_i32 dim 1 : vector<8x256xf32>, i32 -> vector<8x256xf32>
    %92 = vector.broadcast %10 : f32 to vector<8x256xf32>
    %93 = arith.mulf %92, %91 : vector<8x256xf32>
    %94 = arith.addf %78, %93 : vector<8x256xf32>
    %c245_i32 = arith.constant 245 : i32
    %95 = tpu.dynamic_rotate %55 by %c245_i32 dim 1 : vector<8x256xf32>, i32 -> vector<8x256xf32>
    %96 = vector.broadcast %11 : f32 to vector<8x256xf32>
    %97 = arith.mulf %96, %95 : vector<8x256xf32>
    %98 = arith.addf %82, %97 : vector<8x256xf32>
    %c244_i32 = arith.constant 244 : i32
    %99 = tpu.dynamic_rotate %55 by %c244_i32 dim 1 : vector<8x256xf32>, i32 -> vector<8x256xf32>
    %100 = vector.broadcast %12 : f32 to vector<8x256xf32>
    %101 = arith.mulf %100, %99 : vector<8x256xf32>
    %102 = arith.addf %86, %101 : vector<8x256xf32>
    %c243_i32 = arith.constant 243 : i32
    %103 = tpu.dynamic_rotate %55 by %c243_i32 dim 1 : vector<8x256xf32>, i32 -> vector<8x256xf32>
    %104 = vector.broadcast %13 : f32 to vector<8x256xf32>
    %105 = arith.mulf %104, %103 : vector<8x256xf32>
    %106 = arith.addf %90, %105 : vector<8x256xf32>
    %c242_i32 = arith.constant 242 : i32
    %107 = tpu.dynamic_rotate %55 by %c242_i32 dim 1 : vector<8x256xf32>, i32 -> vector<8x256xf32>
    %108 = vector.broadcast %14 : f32 to vector<8x256xf32>
    %109 = arith.mulf %108, %107 : vector<8x256xf32>
    %110 = arith.addf %94, %109 : vector<8x256xf32>
    %c241_i32 = arith.constant 241 : i32
    %111 = tpu.dynamic_rotate %55 by %c241_i32 dim 1 : vector<8x256xf32>, i32 -> vector<8x256xf32>
    %112 = vector.broadcast %15 : f32 to vector<8x256xf32>
    %113 = arith.mulf %112, %111 : vector<8x256xf32>
    %114 = arith.addf %98, %113 : vector<8x256xf32>
    %115 = arith.addf %102, %106 : vector<8x256xf32>
    %116 = arith.addf %110, %114 : vector<8x256xf32>
    %117 = arith.addf %115, %116 : vector<8x256xf32>
    %c1_i32 = arith.constant 1 : i32
    %118 = vector.broadcast %c1_i32 : i32 to vector<8x256xi32>
    %119 = arith.andi %54, %118 : vector<8x256xi32>
    %c0_i32 = arith.constant 0 : i32
    %120 = vector.broadcast %c0_i32 : i32 to vector<8x256xi32>
    %121 = arith.cmpi eq, %119, %120 : vector<8x256xi32>
    %c240_i32 = arith.constant 240 : i32
    %122 = vector.broadcast %c240_i32 : i32 to vector<8x256xi32>
    %123 = arith.cmpi sle, %54, %122 : vector<8x256xi32>
    %124 = arith.andi %121, %123 : vector<8x256xi1>
    %cst = arith.constant 0.000000e+00 : f32
    %125 = vector.broadcast %cst : f32 to vector<8x256xf32>
    %126 = arith.select %124, %117, %125 : vector<8x256xi1>, vector<8x256xf32>
    %127 = vector.shape_cast %126 : vector<8x256xf32> to vector<1x8x256xf32>
    %cst_8 = arith.constant dense<0.000000e+00> : vector<1xf32>
    %128 = vector.multi_reduction <add>, %127, %cst_8 [1, 2] : vector<1x8x256xf32> to vector<1xf32>
    %129 = vector.shape_cast %128 : vector<1xf32> to vector<1x1x1xf32>
    %130 = vector.extract %129[0, 0, 0] : f32 from vector<1x1x1xf32>
    %131 = arith.mulf %126, %126 : vector<8x256xf32>
    %132 = vector.shape_cast %131 : vector<8x256xf32> to vector<1x8x256xf32>
    %cst_9 = arith.constant dense<0.000000e+00> : vector<1xf32>
    %133 = vector.multi_reduction <add>, %132, %cst_9 [1, 2] : vector<1x8x256xf32> to vector<1xf32>
    %134 = vector.shape_cast %133 : vector<1xf32> to vector<1x1x1xf32>
    %135 = vector.extract %134[0, 0, 0] : f32 from vector<1x1x1xf32>
    %cst_10 = arith.constant 0.00103305781 : f32
    %136 = arith.mulf %130, %cst_10 : f32
    %cst_11 = arith.constant 0.00103305781 : f32
    %137 = arith.mulf %135, %cst_11 : f32
    %138 = arith.mulf %136, %136 : f32
    %139 = arith.subf %137, %138 : f32
    %cst_12 = arith.constant 9.99999974E-6 : f32
    %140 = arith.addf %139, %cst_12 : f32
    %141 = math.rsqrt %140 : f32
    %142 = arith.mulf %48, %141 : f32
    %143 = arith.mulf %136, %142 : f32
    %144 = arith.subf %51, %143 : f32
    %145 = vector.broadcast %142 : f32 to vector<8x256xf32>
    %146 = arith.mulf %117, %145 : vector<8x256xf32>
    %147 = vector.broadcast %144 : f32 to vector<8x256xf32>
    %148 = arith.addf %146, %147 : vector<8x256xf32>
    %cst_13 = arith.constant 0.000000e+00 : f32
    %149 = vector.broadcast %cst_13 : f32 to vector<8x256xf32>
    %150 = arith.maximumf %148, %149 : vector<8x256xf32>
    %151 = vector.broadcast %16 : f32 to vector<8x256xf32>
    %152 = arith.mulf %151, %150 : vector<8x256xf32>
    %c254_i32_14 = arith.constant 254 : i32
    %153 = tpu.dynamic_rotate %150 by %c254_i32_14 dim 1 : vector<8x256xf32>, i32 -> vector<8x256xf32>
    %154 = vector.broadcast %17 : f32 to vector<8x256xf32>
    %155 = arith.mulf %154, %153 : vector<8x256xf32>
    %c252_i32_15 = arith.constant 252 : i32
    %156 = tpu.dynamic_rotate %150 by %c252_i32_15 dim 1 : vector<8x256xf32>, i32 -> vector<8x256xf32>
    %157 = vector.broadcast %18 : f32 to vector<8x256xf32>
    %158 = arith.mulf %157, %156 : vector<8x256xf32>
    %c250_i32_16 = arith.constant 250 : i32
    %159 = tpu.dynamic_rotate %150 by %c250_i32_16 dim 1 : vector<8x256xf32>, i32 -> vector<8x256xf32>
    %160 = vector.broadcast %19 : f32 to vector<8x256xf32>
    %161 = arith.mulf %160, %159 : vector<8x256xf32>
    %c248_i32_17 = arith.constant 248 : i32
    %162 = tpu.dynamic_rotate %150 by %c248_i32_17 dim 1 : vector<8x256xf32>, i32 -> vector<8x256xf32>
    %163 = vector.broadcast %20 : f32 to vector<8x256xf32>
    %164 = arith.mulf %163, %162 : vector<8x256xf32>
    %165 = arith.addf %152, %164 : vector<8x256xf32>
    %c246_i32_18 = arith.constant 246 : i32
    %166 = tpu.dynamic_rotate %150 by %c246_i32_18 dim 1 : vector<8x256xf32>, i32 -> vector<8x256xf32>
    %167 = vector.broadcast %21 : f32 to vector<8x256xf32>
    %168 = arith.mulf %167, %166 : vector<8x256xf32>
    %169 = arith.addf %155, %168 : vector<8x256xf32>
    %c244_i32_19 = arith.constant 244 : i32
    %170 = tpu.dynamic_rotate %150 by %c244_i32_19 dim 1 : vector<8x256xf32>, i32 -> vector<8x256xf32>
    %171 = vector.broadcast %22 : f32 to vector<8x256xf32>
    %172 = arith.mulf %171, %170 : vector<8x256xf32>
    %173 = arith.addf %158, %172 : vector<8x256xf32>
    %c242_i32_20 = arith.constant 242 : i32
    %174 = tpu.dynamic_rotate %150 by %c242_i32_20 dim 1 : vector<8x256xf32>, i32 -> vector<8x256xf32>
    %175 = vector.broadcast %23 : f32 to vector<8x256xf32>
    %176 = arith.mulf %175, %174 : vector<8x256xf32>
    %177 = arith.addf %161, %176 : vector<8x256xf32>
    %c240_i32_21 = arith.constant 240 : i32
    %178 = tpu.dynamic_rotate %150 by %c240_i32_21 dim 1 : vector<8x256xf32>, i32 -> vector<8x256xf32>
    %179 = vector.broadcast %24 : f32 to vector<8x256xf32>
    %180 = arith.mulf %179, %178 : vector<8x256xf32>
    %181 = arith.addf %165, %180 : vector<8x256xf32>
    %c238_i32 = arith.constant 238 : i32
    %182 = tpu.dynamic_rotate %150 by %c238_i32 dim 1 : vector<8x256xf32>, i32 -> vector<8x256xf32>
    %183 = vector.broadcast %25 : f32 to vector<8x256xf32>
    %184 = arith.mulf %183, %182 : vector<8x256xf32>
    %185 = arith.addf %169, %184 : vector<8x256xf32>
    %c236_i32 = arith.constant 236 : i32
    %186 = tpu.dynamic_rotate %150 by %c236_i32 dim 1 : vector<8x256xf32>, i32 -> vector<8x256xf32>
    %187 = vector.broadcast %26 : f32 to vector<8x256xf32>
    %188 = arith.mulf %187, %186 : vector<8x256xf32>
    %189 = arith.addf %173, %188 : vector<8x256xf32>
    %c234_i32 = arith.constant 234 : i32
    %190 = tpu.dynamic_rotate %150 by %c234_i32 dim 1 : vector<8x256xf32>, i32 -> vector<8x256xf32>
    %191 = vector.broadcast %27 : f32 to vector<8x256xf32>
    %192 = arith.mulf %191, %190 : vector<8x256xf32>
    %193 = arith.addf %177, %192 : vector<8x256xf32>
    %c232_i32 = arith.constant 232 : i32
    %194 = tpu.dynamic_rotate %150 by %c232_i32 dim 1 : vector<8x256xf32>, i32 -> vector<8x256xf32>
    %195 = vector.broadcast %28 : f32 to vector<8x256xf32>
    %196 = arith.mulf %195, %194 : vector<8x256xf32>
    %197 = arith.addf %181, %196 : vector<8x256xf32>
    %c230_i32 = arith.constant 230 : i32
    %198 = tpu.dynamic_rotate %150 by %c230_i32 dim 1 : vector<8x256xf32>, i32 -> vector<8x256xf32>
    %199 = vector.broadcast %29 : f32 to vector<8x256xf32>
    %200 = arith.mulf %199, %198 : vector<8x256xf32>
    %201 = arith.addf %185, %200 : vector<8x256xf32>
    %c228_i32 = arith.constant 228 : i32
    %202 = tpu.dynamic_rotate %150 by %c228_i32 dim 1 : vector<8x256xf32>, i32 -> vector<8x256xf32>
    %203 = vector.broadcast %30 : f32 to vector<8x256xf32>
    %204 = arith.mulf %203, %202 : vector<8x256xf32>
    %205 = arith.addf %189, %204 : vector<8x256xf32>
    %c226_i32 = arith.constant 226 : i32
    %206 = tpu.dynamic_rotate %150 by %c226_i32 dim 1 : vector<8x256xf32>, i32 -> vector<8x256xf32>
    %207 = vector.broadcast %31 : f32 to vector<8x256xf32>
    %208 = arith.mulf %207, %206 : vector<8x256xf32>
    %209 = arith.addf %193, %208 : vector<8x256xf32>
    %210 = arith.addf %197, %201 : vector<8x256xf32>
    %211 = arith.addf %205, %209 : vector<8x256xf32>
    %212 = arith.addf %210, %211 : vector<8x256xf32>
    %c3_i32 = arith.constant 3 : i32
    %213 = vector.broadcast %c3_i32 : i32 to vector<8x256xi32>
    %214 = arith.andi %54, %213 : vector<8x256xi32>
    %c0_i32_22 = arith.constant 0 : i32
    %215 = vector.broadcast %c0_i32_22 : i32 to vector<8x256xi32>
    %216 = arith.cmpi eq, %214, %215 : vector<8x256xi32>
    %c208_i32 = arith.constant 208 : i32
    %217 = vector.broadcast %c208_i32 : i32 to vector<8x256xi32>
    %218 = arith.cmpi sle, %54, %217 : vector<8x256xi32>
    %219 = arith.andi %216, %218 : vector<8x256xi1>
    %cst_23 = arith.constant 0.000000e+00 : f32
    %220 = vector.broadcast %cst_23 : f32 to vector<8x256xf32>
    %221 = arith.select %219, %212, %220 : vector<8x256xi1>, vector<8x256xf32>
    %222 = vector.shape_cast %221 : vector<8x256xf32> to vector<1x8x256xf32>
    %cst_24 = arith.constant dense<0.000000e+00> : vector<1xf32>
    %223 = vector.multi_reduction <add>, %222, %cst_24 [1, 2] : vector<1x8x256xf32> to vector<1xf32>
    %224 = vector.shape_cast %223 : vector<1xf32> to vector<1x1x1xf32>
    %225 = vector.extract %224[0, 0, 0] : f32 from vector<1x1x1xf32>
    %226 = arith.mulf %221, %221 : vector<8x256xf32>
    %227 = vector.shape_cast %226 : vector<8x256xf32> to vector<1x8x256xf32>
    %cst_25 = arith.constant dense<0.000000e+00> : vector<1xf32>
    %228 = vector.multi_reduction <add>, %227, %cst_25 [1, 2] : vector<1x8x256xf32> to vector<1xf32>
    %229 = vector.shape_cast %228 : vector<1xf32> to vector<1x1x1xf32>
    %230 = vector.extract %229[0, 0, 0] : f32 from vector<1x1x1xf32>
    %cst_26 = arith.constant 0.0023584906 : f32
    %231 = arith.mulf %225, %cst_26 : f32
    %cst_27 = arith.constant 0.0023584906 : f32
    %232 = arith.mulf %230, %cst_27 : f32
    %233 = arith.mulf %231, %231 : f32
    %234 = arith.subf %232, %233 : f32
    %cst_28 = arith.constant 9.99999974E-6 : f32
    %235 = arith.addf %234, %cst_28 : f32
    %236 = math.rsqrt %235 : f32
    %237 = arith.mulf %49, %236 : f32
    %238 = arith.mulf %231, %237 : f32
    %239 = arith.subf %52, %238 : f32
    %240 = vector.broadcast %237 : f32 to vector<8x256xf32>
    %241 = arith.mulf %212, %240 : vector<8x256xf32>
    %242 = vector.broadcast %239 : f32 to vector<8x256xf32>
    %243 = arith.addf %241, %242 : vector<8x256xf32>
    %cst_29 = arith.constant 0.000000e+00 : f32
    %244 = vector.broadcast %cst_29 : f32 to vector<8x256xf32>
    %245 = arith.maximumf %243, %244 : vector<8x256xf32>
    %246 = vector.broadcast %32 : f32 to vector<8x256xf32>
    %247 = arith.mulf %246, %245 : vector<8x256xf32>
    %c252_i32_30 = arith.constant 252 : i32
    %248 = tpu.dynamic_rotate %245 by %c252_i32_30 dim 1 : vector<8x256xf32>, i32 -> vector<8x256xf32>
    %249 = vector.broadcast %33 : f32 to vector<8x256xf32>
    %250 = arith.mulf %249, %248 : vector<8x256xf32>
    %c248_i32_31 = arith.constant 248 : i32
    %251 = tpu.dynamic_rotate %245 by %c248_i32_31 dim 1 : vector<8x256xf32>, i32 -> vector<8x256xf32>
    %252 = vector.broadcast %34 : f32 to vector<8x256xf32>
    %253 = arith.mulf %252, %251 : vector<8x256xf32>
    %c244_i32_32 = arith.constant 244 : i32
    %254 = tpu.dynamic_rotate %245 by %c244_i32_32 dim 1 : vector<8x256xf32>, i32 -> vector<8x256xf32>
    %255 = vector.broadcast %35 : f32 to vector<8x256xf32>
    %256 = arith.mulf %255, %254 : vector<8x256xf32>
    %c240_i32_33 = arith.constant 240 : i32
    %257 = tpu.dynamic_rotate %245 by %c240_i32_33 dim 1 : vector<8x256xf32>, i32 -> vector<8x256xf32>
    %258 = vector.broadcast %36 : f32 to vector<8x256xf32>
    %259 = arith.mulf %258, %257 : vector<8x256xf32>
    %260 = arith.addf %247, %259 : vector<8x256xf32>
    %c236_i32_34 = arith.constant 236 : i32
    %261 = tpu.dynamic_rotate %245 by %c236_i32_34 dim 1 : vector<8x256xf32>, i32 -> vector<8x256xf32>
    %262 = vector.broadcast %37 : f32 to vector<8x256xf32>
    %263 = arith.mulf %262, %261 : vector<8x256xf32>
    %264 = arith.addf %250, %263 : vector<8x256xf32>
    %c232_i32_35 = arith.constant 232 : i32
    %265 = tpu.dynamic_rotate %245 by %c232_i32_35 dim 1 : vector<8x256xf32>, i32 -> vector<8x256xf32>
    %266 = vector.broadcast %38 : f32 to vector<8x256xf32>
    %267 = arith.mulf %266, %265 : vector<8x256xf32>
    %268 = arith.addf %253, %267 : vector<8x256xf32>
    %c228_i32_36 = arith.constant 228 : i32
    %269 = tpu.dynamic_rotate %245 by %c228_i32_36 dim 1 : vector<8x256xf32>, i32 -> vector<8x256xf32>
    %270 = vector.broadcast %39 : f32 to vector<8x256xf32>
    %271 = arith.mulf %270, %269 : vector<8x256xf32>
    %272 = arith.addf %256, %271 : vector<8x256xf32>
    %c224_i32 = arith.constant 224 : i32
    %273 = tpu.dynamic_rotate %245 by %c224_i32 dim 1 : vector<8x256xf32>, i32 -> vector<8x256xf32>
    %274 = vector.broadcast %40 : f32 to vector<8x256xf32>
    %275 = arith.mulf %274, %273 : vector<8x256xf32>
    %276 = arith.addf %260, %275 : vector<8x256xf32>
    %c220_i32 = arith.constant 220 : i32
    %277 = tpu.dynamic_rotate %245 by %c220_i32 dim 1 : vector<8x256xf32>, i32 -> vector<8x256xf32>
    %278 = vector.broadcast %41 : f32 to vector<8x256xf32>
    %279 = arith.mulf %278, %277 : vector<8x256xf32>
    %280 = arith.addf %264, %279 : vector<8x256xf32>
    %c216_i32 = arith.constant 216 : i32
    %281 = tpu.dynamic_rotate %245 by %c216_i32 dim 1 : vector<8x256xf32>, i32 -> vector<8x256xf32>
    %282 = vector.broadcast %42 : f32 to vector<8x256xf32>
    %283 = arith.mulf %282, %281 : vector<8x256xf32>
    %284 = arith.addf %268, %283 : vector<8x256xf32>
    %c212_i32 = arith.constant 212 : i32
    %285 = tpu.dynamic_rotate %245 by %c212_i32 dim 1 : vector<8x256xf32>, i32 -> vector<8x256xf32>
    %286 = vector.broadcast %43 : f32 to vector<8x256xf32>
    %287 = arith.mulf %286, %285 : vector<8x256xf32>
    %288 = arith.addf %272, %287 : vector<8x256xf32>
    %c208_i32_37 = arith.constant 208 : i32
    %289 = tpu.dynamic_rotate %245 by %c208_i32_37 dim 1 : vector<8x256xf32>, i32 -> vector<8x256xf32>
    %290 = vector.broadcast %44 : f32 to vector<8x256xf32>
    %291 = arith.mulf %290, %289 : vector<8x256xf32>
    %292 = arith.addf %276, %291 : vector<8x256xf32>
    %c204_i32 = arith.constant 204 : i32
    %293 = tpu.dynamic_rotate %245 by %c204_i32 dim 1 : vector<8x256xf32>, i32 -> vector<8x256xf32>
    %294 = vector.broadcast %45 : f32 to vector<8x256xf32>
    %295 = arith.mulf %294, %293 : vector<8x256xf32>
    %296 = arith.addf %280, %295 : vector<8x256xf32>
    %c200_i32 = arith.constant 200 : i32
    %297 = tpu.dynamic_rotate %245 by %c200_i32 dim 1 : vector<8x256xf32>, i32 -> vector<8x256xf32>
    %298 = vector.broadcast %46 : f32 to vector<8x256xf32>
    %299 = arith.mulf %298, %297 : vector<8x256xf32>
    %300 = arith.addf %284, %299 : vector<8x256xf32>
    %c196_i32 = arith.constant 196 : i32
    %301 = tpu.dynamic_rotate %245 by %c196_i32 dim 1 : vector<8x256xf32>, i32 -> vector<8x256xf32>
    %302 = vector.broadcast %47 : f32 to vector<8x256xf32>
    %303 = arith.mulf %302, %301 : vector<8x256xf32>
    %304 = arith.addf %288, %303 : vector<8x256xf32>
    %305 = arith.addf %292, %296 : vector<8x256xf32>
    %306 = arith.addf %300, %304 : vector<8x256xf32>
    %307 = arith.addf %305, %306 : vector<8x256xf32>
    %c7_i32 = arith.constant 7 : i32
    %308 = vector.broadcast %c7_i32 : i32 to vector<8x256xi32>
    %309 = arith.andi %54, %308 : vector<8x256xi32>
    %c0_i32_38 = arith.constant 0 : i32
    %310 = vector.broadcast %c0_i32_38 : i32 to vector<8x256xi32>
    %311 = arith.cmpi eq, %309, %310 : vector<8x256xi32>
    %c144_i32 = arith.constant 144 : i32
    %312 = vector.broadcast %c144_i32 : i32 to vector<8x256xi32>
    %313 = arith.cmpi sle, %54, %312 : vector<8x256xi32>
    %314 = arith.andi %311, %313 : vector<8x256xi1>
    %cst_39 = arith.constant 0.000000e+00 : f32
    %315 = vector.broadcast %cst_39 : f32 to vector<8x256xf32>
    %316 = arith.select %314, %307, %315 : vector<8x256xi1>, vector<8x256xf32>
    %317 = vector.shape_cast %316 : vector<8x256xf32> to vector<1x8x256xf32>
    %cst_40 = arith.constant dense<0.000000e+00> : vector<1xf32>
    %318 = vector.multi_reduction <add>, %317, %cst_40 [1, 2] : vector<1x8x256xf32> to vector<1xf32>
    %319 = vector.shape_cast %318 : vector<1xf32> to vector<1x1x1xf32>
    %320 = vector.extract %319[0, 0, 0] : f32 from vector<1x1x1xf32>
    %321 = arith.mulf %316, %316 : vector<8x256xf32>
    %322 = vector.shape_cast %321 : vector<8x256xf32> to vector<1x8x256xf32>
    %cst_41 = arith.constant dense<0.000000e+00> : vector<1xf32>
    %323 = vector.multi_reduction <add>, %322, %cst_41 [1, 2] : vector<1x8x256xf32> to vector<1xf32>
    %324 = vector.shape_cast %323 : vector<1xf32> to vector<1x1x1xf32>
    %325 = vector.extract %324[0, 0, 0] : f32 from vector<1x1x1xf32>
    %cst_42 = arith.constant 0.00657894742 : f32
    %326 = arith.mulf %320, %cst_42 : f32
    %cst_43 = arith.constant 0.00657894742 : f32
    %327 = arith.mulf %325, %cst_43 : f32
    %328 = arith.mulf %326, %326 : f32
    %329 = arith.subf %327, %328 : f32
    %cst_44 = arith.constant 9.99999974E-6 : f32
    %330 = arith.addf %329, %cst_44 : f32
    %331 = math.rsqrt %330 : f32
    %332 = arith.mulf %50, %331 : f32
    %333 = arith.mulf %326, %332 : f32
    %334 = arith.subf %53, %333 : f32
    %335 = vector.broadcast %332 : f32 to vector<8x256xf32>
    %336 = arith.mulf %307, %335 : vector<8x256xf32>
    %337 = vector.broadcast %334 : f32 to vector<8x256xf32>
    %338 = arith.addf %336, %337 : vector<8x256xf32>
    %cst_45 = arith.constant 0.000000e+00 : f32
    %339 = vector.broadcast %cst_45 : f32 to vector<8x256xf32>
    %340 = arith.maximumf %338, %339 : vector<8x256xf32>
    %c0_46 = arith.constant 0 : index
    %c0_47 = arith.constant 0 : index
    %341 = vector.load %arg3[%c0_46, %c0_47] : memref<8x256xf32, #tpu.memory_space<vmem>>, vector<8x256xf32>
    tpu.vector_store %arg3[%c0_46, %c0_47], %340 {strides = array<i32>} : memref<8x256xf32, #tpu.memory_space<vmem>>, vector<8x256xf32>,
    return
  }
}

</mosaic_0001>

<bundles_post_ra>
// kernel: hhead_forward.1
= control target key start
LH: loop header
LB: loop body
LE: loop exit
PB: predicated region body
PF: predicated region fallthrough
CT: control target
= control target key end

     0   :  { %8 = vsyncpa [#allocation3], 0  ;;  %s1809_s0 = inlined_call_operand.vmem [shape: f32[8,256], index: 0, kind: input, shape index: {}]   ;;  %s1810_s1 = inlined_call_operand.vmem [shape: f32[48], index: 1, kind: input, shape index: {}]   ;;  %s1811_s2 = inlined_call_operand.vmem [shape: f32[6], index: 2, kind: input, shape index: {}]   ;;  %s1812_s3 = inlined_call_operand.vmem [shape: f32[8,256], index: 3, kind: output, shape index: {}]  }
   0x1   :  { %s18_s14 = sshll.u32 %s1810_s1, 4  ;;  %s19_s14 = int_to_ptr.vmem [resolvable:$true] %s18_s14 }
   0x2   :  { %9 = vsyncpa [#allocation5], 0  ;;  %s28_s17 = sshll.u32 %s1811_s2, 4  ;;  %s903_s18 = scalar_lea.vmem %s19_s14, 16  ;;  %s29_s17 = int_to_ptr.vmem [resolvable:$true] %s28_s17 }
   0x3   :  { %p904_p0 = scmp.ne.s32.totalorder %s19_s14, %s903_s18  ;;  %p908_p1 = scmp.lt.s32.totalorder %s19_s14, %s19_s14 }
   0x4   :  { %p909_p2 = scmp.lt.s32.totalorder %s903_s18, %s903_s18 }
   0x6   :  { %p910_p3 = por %p909_p2, %p908_p1 }
   0x8   :  { %p911_p4 = pnand %p910_p3, %p904_p0 }
   0xa   :  { %914 = shalt.err (!%p911_p4)
}
   0xb   :  { %s931_s19 = smov [#allocation2]   ;;  %s915_s20 = scalar_lea.vmem %s29_s17, 16 }
   0xc   :  { %21 = dma.vmem_to_smem %s19_s14, 16, %s931_s19, [#allocation3]  }
   0xd   :  { %p916_p5 = scmp.ne.s32.totalorder %s29_s17, %s915_s20  ;;  %p920_p6 = scmp.lt.s32.totalorder %s29_s17, %s29_s17 }
   0xe   :  { %p921_p7 = scmp.lt.s32.totalorder %s915_s20, %s915_s20 }
  0x10   :  { %p922_p8 = por %p921_p7, %p920_p6 }
  0x12   :  { %p923_p9 = pnand %p922_p8, %p916_p5 }
  0x14   :  { %926 = shalt.err (!%p923_p9)
}
  0x15   :  { %s932_s1 = smov [#allocation4]  }
  0x16   :  { %31 = dma.vmem_to_smem %s29_s17, 16, %s932_s1, [#allocation5]  }
  0x17   :  { %927 = dma.done.wait [#allocation3], 16  }
  0x18   :  { %928 = vsyncadd [#allocation3], 4294967280 }
  0x19   :  { %929 = dma.done.wait [#allocation5], 16  }
  0x1a   :  { %930 = vsyncadd [#allocation5], 4294967280 }
  0x1b   :  { %38 = sfence }
  0x1c   :  { %v993_v0 = vld [vmem:[%s1809_s0] sm:$0xff]  ;;  %s933_s22 = smov 126   ;;  %s934_s23 = smov 127   ;;  %v1001_v1 = vld [vmem:[%s1809_s0 + $0x8] sm:$0xff]  ;;  %v93_v14 = vlaneseq }
  0x1d   :  { %111 = vrot.lane.b32.xlu1 %v993_v0, %s933_s22  ;;  %101 = vrot.lane.b32.xlu0 %v993_v0, %s934_s23  ;;  %s935_s26 = smov 125   ;;  %s936_s27 = smov 124  }
  0x1e   :  { %s937_s28 = smov 123   ;;  %s938_s0 = smov 122   ;;  %v1096_v17 = vand.u32 127, %v93_v14 }
  0x1f   :  { %s939_s29 = smov 121   ;;  %s940_s30 = smov 120  }
  0x20   :  { %s941_s4 = smov 119   ;;  %s942_s5 = smov 118   ;;  %vm115_vm0 = vcmp.lt.s32.totalorder %v1096_v17, 126  ;;  %vm105_vm1 = vcmp.lt.s32.totalorder %v1096_v17, 127  ;;  %vm125_vm2 = vcmp.lt.s32.totalorder %v1096_v17, 125  ;;  %vm135_vm3 = vcmp.lt.s32.totalorder %v1096_v17, 124 }
  0x21   :  { %113 = vrot.lane.b32.xlu1 %v1001_v1, %s933_s22  ;;  %103 = vrot.lane.b32.xlu0 %v1001_v1, %s934_s23  ;;  %s943_s6 = smov 117   ;;  %s944_s7 = smov 116   ;;  %vm147_vm4 = vcmp.lt.s32.totalorder %v1096_v17, 123  ;;  %vm159_vm5 = vcmp.lt.s32.totalorder %v1096_v17, 122  ;;  %vm171_vm6 = vcmp.lt.s32.totalorder %v1096_v17, 121  ;;  %v1126_v28 = vadd.s32 128, %v1096_v17 }
  0x22   :  { %s945_s8 = smov 115   ;;  %s946_s9 = smov 114   ;;  %vm183_vm7 = vcmp.lt.s32.totalorder %v1096_v17, 120  ;;  %vm195_vm8 = vcmp.lt.s32.totalorder %v1096_v17, 119  ;;  %vm207_vm9 = vcmp.lt.s32.totalorder %v1096_v17, 118  ;;  %vm219_vm10 = vcmp.lt.s32.totalorder %v1096_v17, 117 }
  0x23   :  { %s947_s10 = smov 113   ;;  %s1058_s11 = sld [smem:[#allocation2 + $0x2]]  ;;  %v281_v45 = vand.u32 1, %v1096_v17  ;;  %v282_v46 = vand.u32 1, %v1126_v28  ;;  %vm243_vm11 = vcmp.lt.s32.totalorder %v1096_v17, 115  ;;  %vm231_vm12 = vcmp.lt.s32.totalorder %v1096_v17, 116 }
  0x24   :  { %s1060_s12 = sld [smem:[#allocation2 + $0x1]]  ;;  %vm255_vm13 = vcmp.lt.s32.totalorder %v1096_v17, 114  ;;  %vm267_vm14 = vcmp.lt.s32.totalorder %v1096_v17, 113 }
  0x25   :  { %123 = vrot.lane.b32.xlu1 %v1001_v1, %s935_s26  ;;  %121 = vrot.lane.b32.xlu0 %v993_v0, %s935_s26  ;;  %s1066_s13 = sld [smem:[#allocation2 + $0x3]]  ;;  %vm284_vm15 = vcmp.eq.s32.totalorder %v282_v46, 0 }
  0x26   :  { %s1068_s14 = sld [smem:[#allocation2]] }
  0x27   :  { %s1070_s15 = sld [smem:[#allocation2 + $0x4]] }
  0x28   :  { %s1072_s16 = sld [smem:[#allocation2 + $0x5]] }
  0x29   :  { %133 = vrot.lane.b32.xlu1 %v1001_v1, %s936_s27  ;;  %131 = vrot.lane.b32.xlu0 %v993_v0, %s936_s27  ;;  %s1078_s17 = sld [smem:[#allocation2 + $0x6]]  ;;  %v118_v23 = vstv %s1058_s11 }
  0x2a   :  { %s1080_s18 = sld [smem:[#allocation2 + $0x7]]  ;;  %v108_v24 = vstv %s1060_s12 }
  0x2b   :  { %s1082_s19 = sld [smem:[#allocation2 + $0x8]]  ;;  %v128_v25 = vstv %s1066_s13 }
  0x2c   :  { %s1088_s20 = sld [smem:[#allocation2 + $0x9]]  ;;  %v98_v20 = vstv %s1068_s14 }
  0x2d   :  { %145 = vrot.lane.b32.xlu1 %v1001_v1, %s937_s28  ;;  %143 = vrot.lane.b32.xlu0 %v993_v0, %s937_s28  ;;  %s1090_s1 = sld [smem:[#allocation2 + $0xa]]  ;;  %v99_v26 = vmul.f32 %v98_v20, %v993_v0  ;;  %v100_v27 = vmul.f32 %v98_v20, %v1001_v1  ;;  %v138_v29 = vstv %s1070_s15 }
  0x2e   :  { %s1092_s2 = sld [smem:[#allocation2 + $0xb]]  ;;  %v150_v30 = vstv %s1072_s16 }
  0x2f   :  { %s1094_s21 = sld [smem:[#allocation2 + $0xc]]  ;;  %v162_v31 = vstv %s1078_s17  ;;  %s952_s17 = smov 104  }
  0x30   :  { %s1102_s23 = sld [smem:[#allocation2 + $0xd]]  ;;  %v174_v32 = vstv %s1080_s18  ;;  %s953_s18 = smov 102  }
  0x31   :  { %157 = vrot.lane.b32.xlu1 %v1001_v1, %s938_s0  ;;  %155 = vrot.lane.b32.xlu0 %v993_v0, %s938_s0  ;;  %s1104_s24 = sld [smem:[#allocation2 + $0xe]]  ;;  %v186_v35 = vstv %s1082_s19  ;;  %s954_s19 = smov 100  }
  0x32   :  { %s1106_s25 = sld [smem:[#allocation2 + $0xf]]  ;;  %v198_v36 = vstv %s1088_s20  ;;  %s955_s20 = smov 98  }
  0x33   :  { %v210_v37 = vstv %s1090_s1  ;;  %s87_s11 = sld [smem:[#allocation4]] }
  0x34   :  { %v222_v38 = vstv %s1092_s2  ;;  %s843_s12 = sld [smem:[#allocation4 + $0x1]] }
  0x35   :  { %169 = vrot.lane.b32.xlu1 %v1001_v1, %s939_s29  ;;  %167 = vrot.lane.b32.xlu0 %v993_v0, %s939_s29  ;;  %v234_v39 = vstv %s1094_s21  ;;  %s1357_s1 = sld [smem:[#allocation2 + $0x10]] }
  0x36   :  { %v246_v40 = vstv %s1102_s23  ;;  %s1359_s2 = sld [smem:[#allocation2 + $0x11]] }
  0x37   :  { %v258_v41 = vstv %s1104_s24  ;;  %s1361_s21 = sld [smem:[#allocation2 + $0x12]] }
  0x38   :  { %v270_v42 = vstv %s1106_s25  ;;  %s1363_s23 = sld [smem:[#allocation2 + $0x13]] }
  0x39   :  { %181 = vrot.lane.b32.xlu1 %v1001_v1, %s940_s30  ;;  %179 = vrot.lane.b32.xlu0 %v993_v0, %s940_s30  ;;  %s1365_s24 = sld [smem:[#allocation2 + $0x14]] }
  0x3a   :  { %s1367_s25 = sld [smem:[#allocation2 + $0x15]] }
  0x3d   :  { %193 = vrot.lane.b32.xlu1 %v1001_v1, %s941_s4  ;;  %191 = vrot.lane.b32.xlu0 %v993_v0, %s941_s4 }
  0x41   :  { %205 = vrot.lane.b32.xlu1 %v1001_v1, %s942_s5  ;;  %203 = vrot.lane.b32.xlu0 %v993_v0, %s942_s5 }
  0x45   :  { %217 = vrot.lane.b32.xlu1 %v1001_v1, %s943_s6  ;;  %215 = vrot.lane.b32.xlu0 %v993_v0, %s943_s6 }
  0x49   :  { %229 = vrot.lane.b32.xlu1 %v1001_v1, %s944_s7  ;;  %227 = vrot.lane.b32.xlu0 %v993_v0, %s944_s7 }
  0x4d   :  { %241 = vrot.lane.b32.xlu1 %v1001_v1, %s945_s8  ;;  %239 = vrot.lane.b32.xlu0 %v993_v0, %s945_s8 }
  0x51   :  { %253 = vrot.lane.b32.xlu1 %v1001_v1, %s946_s9  ;;  %251 = vrot.lane.b32.xlu0 %v993_v0, %s946_s9 }
  0x55   :  { %265 = vrot.lane.b32.xlu1 %v1001_v1, %s947_s10  ;;  %263 = vrot.lane.b32.xlu0 %v993_v0, %s947_s10 }
  0x8f   :  { %v1044_v2 = vpop.permute.xlu1 %111  ;;  %v1046_v3 = vpop.permute.xlu0 %101 }
  0x93   :  { %v1048_v4 = vpop.permute.xlu1 %113  ;;  %v1050_v5 = vpop.permute.xlu0 %103 }
  0x94   :  { %v116_v47 = vsel %vm115_vm0, %v1044_v2, %v1048_v4  ;;  %v117_v48 = vsel %vm115_vm0, %v1048_v4, %v1044_v2  ;;  %v106_v53 = vsel %vm105_vm1, %v1046_v3, %v1050_v5  ;;  %v107_v54 = vsel %vm105_vm1, %v1050_v5, %v1046_v3 }
  0x95   :  { %v119_v1 = vmul.f32 %v118_v23, %v116_v47  ;;  %v120_v2 = vmul.f32 %v118_v23, %v117_v48  ;;  %vm286_vm1 = vcmp.le.s32.totalorder %v1126_v28, 240 }
  0x97   :  { %v1052_v6 = vpop.permute.xlu1 %123  ;;  %v1054_v7 = vpop.permute.xlu0 %121 }
  0x98   :  { %v126_v61 = vsel %vm125_vm2, %v1054_v7, %v1052_v6  ;;  %v127_v62 = vsel %vm125_vm2, %v1052_v6, %v1054_v7  ;;  %vm283_vm2 = vcmp.eq.s32.totalorder %v281_v45, 0 }
  0x99   :  { %v130_v14 = vmul.f32 %v128_v25, %v127_v62 }
  0x9b   :  { %v1056_v8 = vpop.permute.xlu1 %133  ;;  %v132_v9 = vpop.permute.xlu0 %131 }
  0x9c   :  { %v136_v43 = vsel %vm135_vm3, %v132_v9, %v1056_v8  ;;  %v137_v44 = vsel %vm135_vm3, %v1056_v8, %v132_v9  ;;  %v109_v9 = vmul.f32 %v108_v24, %v106_v53 }
  0x9d   :  { %v139_v57 = vmul.f32 %v138_v29, %v136_v43  ;;  %v140_v58 = vmul.f32 %v138_v29, %v137_v44 }
  0x9f   :  { %v1062_v10 = vpop.permute.xlu1 %145  ;;  %v1064_v11 = vpop.permute.xlu0 %143 }
  0xa0   :  { %v148_v49 = vsel %vm147_vm4, %v1064_v11, %v1062_v10  ;;  %v149_v50 = vsel %vm147_vm4, %v1062_v10, %v1064_v11  ;;  %v110_v10 = vmul.f32 %v108_v24, %v107_v54  ;;  %vm288_vm4 = vmand %vm284_vm15, %vm286_vm1  ;;  %vm513_vm15 = vcmp.le.s32.totalorder %v1126_v28, 208 }
  0xa1   :  { %v151_v63 = vmul.f32 %v150_v30, %v148_v49  ;;  %v152_v0 = vmul.f32 %v150_v30, %v149_v50 }
  0xa3   :  { %v1074_v12 = vpop.permute.xlu1 %157  ;;  %v1076_v13 = vpop.permute.xlu0 %155  ;;  %v153_v6 = vadd.f32 %v151_v63, %v109_v9  ;;  %v154_v7 = vadd.f32 %v152_v0, %v110_v10 }
  0xa4   :  { %v160_v55 = vsel %vm159_vm5, %v1076_v13, %v1074_v12  ;;  %v161_v56 = vsel %vm159_vm5, %v1074_v12, %v1076_v13  ;;  %v129_v13 = vmul.f32 %v128_v25, %v126_v61 }
  0xa5   :  { %v163_v3 = vmul.f32 %v162_v31, %v160_v55  ;;  %v164_v4 = vmul.f32 %v162_v31, %v161_v56 }
  0xa7   :  { %v1084_v15 = vpop.permute.xlu1 %169  ;;  %v1086_v16 = vpop.permute.xlu0 %167  ;;  %v165_v24 = vadd.f32 %v163_v3, %v119_v1  ;;  %v166_v25 = vadd.f32 %v164_v4, %v120_v2 }
  0xa8   :  { %v172_v59 = vsel %vm171_vm6, %v1086_v16, %v1084_v15  ;;  %v173_v60 = vsel %vm171_vm6, %v1084_v15, %v1086_v16  ;;  %v141_v15 = vadd.f32 %v139_v57, %v99_v26  ;;  %v142_v16 = vadd.f32 %v140_v58, %v100_v27 }
  0xa9   :  { %v175_v11 = vmul.f32 %v174_v32, %v172_v59  ;;  %v176_v12 = vmul.f32 %v174_v32, %v173_v60  ;;  %vm410_vm6 = vcmp.lt.s32.totalorder %v1096_v17, 112 }
  0xab   :  { %v1098_v18 = vpop.permute.xlu1 %181  ;;  %v1100_v19 = vpop.permute.xlu0 %179  ;;  %v177_v31 = vadd.f32 %v175_v11, %v129_v13  ;;  %v178_v32 = vadd.f32 %v176_v12, %v130_v14 }
  0xac   :  { %v184_v20 = vsel %vm183_vm7, %v1100_v19, %v1098_v18  ;;  %v185_v23 = vsel %vm183_vm7, %v1098_v18, %v1100_v19 }
  0xad   :  { %v187_v43 = vmul.f32 %v186_v35, %v184_v20 }
  0xaf   :  { %v1110_v21 = vpop.permute.xlu1 %193  ;;  %v1112_v22 = vpop.permute.xlu0 %191  ;;  %v189_v56 = vadd.f32 %v187_v43, %v141_v15 }
  0xb0   :  { %v196_v26 = vsel %vm195_vm8, %v1112_v22, %v1110_v21  ;;  %v197_v27 = vsel %vm195_vm8, %v1110_v21, %v1112_v22  ;;  %v188_v21 = vmul.f32 %v186_v35, %v185_v23  ;;  %vm422_vm8 = vcmp.lt.s32.totalorder %v1096_v17, 110 }
  0xb1   :  { %v199_v47 = vmul.f32 %v198_v36, %v196_v26  ;;  %v200_v48 = vmul.f32 %v198_v36, %v197_v27 }
  0xb2   :  { %v190_v57 = vadd.f32 %v188_v21, %v142_v16 }
  0xb3   :  { %v1133_v33 = vpop.permute.xlu1 %205  ;;  %v1135_v34 = vpop.permute.xlu0 %203  ;;  %v201_v60 = vadd.f32 %v199_v47, %v153_v6  ;;  %v202_v61 = vadd.f32 %v200_v48, %v154_v7 }
  0xb4   :  { %v208_v18 = vsel %vm207_vm9, %v1135_v34, %v1133_v33  ;;  %v209_v19 = vsel %vm207_vm9, %v1133_v33, %v1135_v34 }
  0xb5   :  { %v211_v35 = vmul.f32 %v210_v37, %v208_v18  ;;  %v212_v49 = vmul.f32 %v210_v37, %v209_v19 }
  0xb7   :  { %v218_v51 = vpop.permute.xlu1 %217  ;;  %v216_v52 = vpop.permute.xlu0 %215  ;;  %v213_v63 = vadd.f32 %v211_v35, %v165_v24  ;;  %v214_v0 = vadd.f32 %v212_v49, %v166_v25 }
  0xb8   :  { %v220_v22 = vsel %vm219_vm10, %v216_v52, %v218_v51  ;;  %v221_v44 = vsel %vm219_vm10, %v218_v51, %v216_v52  ;;  %vm434_vm10 = vcmp.lt.s32.totalorder %v1096_v17, 108 }
  0xb9   :  { %v223_v53 = vmul.f32 %v222_v38, %v220_v22  ;;  %v224_v54 = vmul.f32 %v222_v38, %v221_v44 }
  0xbb   :  { %v230_v5 = vpop.permute.xlu1 %229  ;;  %v228_v8 = vpop.permute.xlu0 %227 }
  0xbc   :  { %v232_v50 = vsel %vm231_vm12, %v228_v8, %v230_v5  ;;  %v233_v51 = vsel %vm231_vm12, %v230_v5, %v228_v8  ;;  %v225_v5 = vadd.f32 %v223_v53, %v177_v31  ;;  %v226_v8 = vadd.f32 %v224_v54, %v178_v32 }
  0xbd   :  { %v235_v62 = vmul.f32 %v234_v39, %v232_v50  ;;  %v236_v38 = vmul.f32 %v234_v39, %v233_v51 }
  0xbf   :  { %v242_v29 = vpop.permute.xlu1 %241  ;;  %v240_v30 = vpop.permute.xlu0 %239  ;;  %v237_v13 = vadd.f32 %v235_v62, %v189_v56  ;;  %v238_v14 = vadd.f32 %v236_v38, %v190_v57 }
  0xc0   :  { %v244_v33 = vsel %vm243_vm11, %v240_v30, %v242_v29  ;;  %v245_v34 = vsel %vm243_vm11, %v242_v29, %v240_v30  ;;  %vm446_vm11 = vcmp.lt.s32.totalorder %v1096_v17, 106 }
  0xc1   :  { %v247_v58 = vmul.f32 %v246_v40, %v244_v33  ;;  %v248_v59 = vmul.f32 %v246_v40, %v245_v34 }
  0xc3   :  { %v254_v36 = vpop.permute.xlu1 %253  ;;  %v252_v52 = vpop.permute.xlu0 %251  ;;  %v249_v10 = vadd.f32 %v247_v58, %v201_v60  ;;  %v250_v11 = vadd.f32 %v248_v59, %v202_v61 }
  0xc4   :  { %v256_v55 = vsel %vm255_vm13, %v252_v52, %v254_v36  ;;  %v257_v37 = vsel %vm255_vm13, %v254_v36, %v252_v52 }
  0xc5   :  { %v259_v1 = vmul.f32 %v258_v41, %v256_v55  ;;  %v260_v2 = vmul.f32 %v258_v41, %v257_v37  ;;  %v275_v7 = vadd.f32 %v249_v10, %v237_v13  ;;  %v276_v20 = vadd.f32 %v250_v11, %v238_v14 }
  0xc6   :  { %v332_v10 = vstv %s1357_s1  ;;  %v350_v13 = vstv %s1361_s21  ;;  %v359_v14 = vstv %s1363_s23  ;;  %s841_s1 = sld [smem:[#allocation4 + $0x2]] }
  0xc7   :  { %v266_v3 = vpop.permute.xlu1 %265  ;;  %v264_v4 = vpop.permute.xlu0 %263  ;;  %v261_v41 = vadd.f32 %v259_v1, %v213_v63  ;;  %v262_v15 = vadd.f32 %v260_v2, %v214_v0 }
  0xc8   :  { %v268_v40 = vsel %vm267_vm14, %v264_v4, %v266_v3  ;;  %v269_v9 = vsel %vm267_vm14, %v266_v3, %v264_v4  ;;  %vm470_vm14 = vcmp.lt.s32.totalorder %v1096_v17, 102 }
  0xc9   :  { %v271_v39 = vmul.f32 %v270_v42, %v268_v40  ;;  %v272_v12 = vmul.f32 %v270_v42, %v269_v9 }
  0xcb   :  { %v273_v16 = vadd.f32 %v271_v39, %v225_v5  ;;  %v274_v6 = vadd.f32 %v272_v12, %v226_v8  ;;  %v341_v12 = vstv %s1359_s2  ;;  %s844_s2 = sld [smem:[#allocation4 + $0x3]] }
  0xcd   :  { %v277_v23 = vadd.f32 %v273_v16, %v261_v41  ;;  %v278_v24 = vadd.f32 %v274_v6, %v262_v15  ;;  %v368_v15 = vstv %s1365_s24  ;;  %v379_v6 = vstv %s1367_s25 }
  0xcf   :  { %v279_v42 = vadd.f32 %v277_v23, %v275_v7  ;;  %v280_v25 = vadd.f32 %v278_v24, %v276_v20 }
  0xd1   :  { %v289_v26 = vsel %vm283_vm2, %v279_v42, 0.0  ;;  %v290_v27 = vsel %vm288_vm4, %v280_v25, 0.0  ;;  %vm637_vm4 = vcmp.lt.s32.totalorder %v1096_v17, 96 }
  0xd2   :  { %v291_v29 = vadd.f32 %v290_v27, %v289_v26  ;;  %v301_v46 = vmul.f32 %v289_v26, %v289_v26  ;;  %v302_v30 = vmul.f32 %v290_v27, %v290_v27 }
  0xd4   :  { %292 = vadd.xlane.f32.xlu0 %v291_v29  ;;  %v303_v31 = vadd.f32 %v302_v30, %v301_v46 }
  0xd6   :  { %304 = vadd.xlane.f32.xlu1 %v303_v31 }
 0x15d   :  { %v293_v32 = vpop.xlane.xlu0 %292 }
 0x15e   :  { %v294_v18 = vrot.slane %v293_v32, 4 }
 0x15f   :  { %v305_v19 = vpop.xlane.xlu1 %304 }
 0x160   :  { %v295_v43 = vadd.f32 %v294_v18, %v293_v32  ;;  %v306_v21 = vrot.slane %v305_v19, 4 }
 0x162   :  { %v296_v22 = vrot.slane %v295_v43, 2  ;;  %v307_v44 = vadd.f32 %v306_v21, %v305_v19  ;;  %v508_v19 = vand.u32 3, %v1096_v17 }
 0x164   :  { %v308_v47 = vrot.slane %v307_v44, 2  ;;  %v297_v45 = vadd.f32 %v296_v22, %v295_v43  ;;  %v509_v43 = vand.u32 3, %v1126_v28  ;;  %vm510_vm1 = vcmp.eq.s32.totalorder %v508_v19, 0 }
 0x166   :  { %v298_v48 = vrot.slane %v297_v45, 1  ;;  %v309_v33 = vadd.f32 %v308_v47, %v307_v44 }
 0x168   :  { %v299_v34 = vadd.f32 %v298_v48, %v297_v45  ;;  %v310_v35 = vrot.slane %v309_v33, 1 }
 0x16a   :  { %846 = vpush %v299_v34  ;;  %v311_v49 = vadd.f32 %v310_v35, %v309_v33 }
 0x16c   :  { %848 = vpush %v311_v49 }
 0x19b   :  { %s847_s26 = spop %846 }
 0x19c   :  { %s313_s28 = smul.f32 0.0010330578, %s847_s26  ;;  %s1369_s26 = sld [smem:[#allocation2 + $0x16]] }
 0x19d   :  { %s849_s29 = spop %848 }
 0x19e   :  { %s315_s4 = smul.f32 %s313_s28, %s313_s28 }
 0x19f   :  { %s314_s6 = smul.f32 0.0010330578, %s849_s29  ;;  %s1373_s29 = sld [smem:[#allocation2 + $0x18]] }
 0x1a1   :  { %s316_s8 = ssub.f32 %s314_s6, %s315_s4 }
 0x1a2   :  { %s1375_s4 = sld [smem:[#allocation2 + $0x19]]  ;;  %v390_v7 = vstv %s1369_s26  ;;  %s963_s26 = smov 68  }
 0x1a3   :  { %s317_s10 = sadd.f32 1e-05, %s316_s8 }
 0x1a4   :  { %s1377_s6 = sld [smem:[#allocation2 + $0x1a]] }
 0x1a5   :  { %v318_v50 = vstv %s317_s10  ;;  %s1379_s8 = sld [smem:[#allocation2 + $0x1b]]  ;;  %v413_v23 = vstv %s1373_s29 }
 0x1a6   :  { %897 = vrsqrt.f32 %v318_v50  ;;  %s1381_s10 = sld [smem:[#allocation2 + $0x1c]] }
 0x1a7   :  { %s1612_s29 = sld [smem:[#allocation2 + $0x21]] }
 0x1aa   :  { %v437_v26 = vstv %s1377_s6  ;;  %s1616_s6 = sld [smem:[#allocation2 + $0x23]] }
 0x1ab   :  { %v449_v27 = vstv %s1379_s8  ;;  %s1618_s8 = sld [smem:[#allocation2 + $0x24]] }
 0x1ac   :  { %v461_v29 = vstv %s1381_s10  ;;  %s1620_s10 = sld [smem:[#allocation2 + $0x25]] }
 0x1b3   :  { %v898_v51 = vpop.eup %897 }
 0x1b4   :  { %850 = vpush %v898_v51 }
 0x1e5   :  { %s851_s13 = spop %850 }
 0x1e6   :  { %s321_s14 = smul.f32 %s851_s13, %s87_s11  ;;  %s1387_s11 = sld [smem:[#allocation2 + $0x1d]] }
 0x1e7   :  { %s1391_s13 = sld [smem:[#allocation2 + $0x1f]] }
 0x1e8   :  { %s322_s15 = smul.f32 %s321_s14, %s313_s28  ;;  %v324_v36 = vstv %s321_s14  ;;  %s1371_s28 = sld [smem:[#allocation2 + $0x17]] }
 0x1e9   :  { %v325_v52 = vmul.f32 %v324_v36, %v279_v42  ;;  %v326_v53 = vmul.f32 %v324_v36, %v280_v25  ;;  %v425_v25 = vstv %s1375_s4  ;;  %s1614_s4 = sld [smem:[#allocation2 + $0x22]] }
 0x1ea   :  { %s323_s16 = ssub.f32 %s843_s12, %s322_s15 }
 0x1eb   :  { %s1389_s12 = sld [smem:[#allocation2 + $0x1e]] }
 0x1ec   :  { %v327_v54 = vstv %s323_s16  ;;  %v473_v46 = vstv %s1387_s11  ;;  %s1622_s11 = sld [smem:[#allocation2 + $0x26]] }
 0x1ed   :  { %v328_v55 = vadd.f32 %v327_v54, %v325_v52  ;;  %v329_v37 = vadd.f32 %v327_v54, %v326_v53  ;;  %v497_v31 = vstv %s1391_s13  ;;  %s1626_s13 = sld [smem:[#allocation2 + $0x28]] }
 0x1ee   :  { %v401_v20 = vstv %s1371_s28  ;;  %s1610_s28 = sld [smem:[#allocation2 + $0x20]] }
 0x1ef   :  { %v1289_v56 = vmax.f32 %v328_v55, 0.0  ;;  %v1291_v57 = vmax.f32 %v329_v37, 0.0 }
 0x1f1   :  { %337 = vrot.lane.b32.xlu1 %v1291_v57, %s933_s22  ;;  %335 = vrot.lane.b32.xlu0 %v1289_v56, %s933_s22  ;;  %s948_s22 = smov 112   ;;  %v334_v41 = vmul.f32 %v332_v10, %v1291_v57  ;;  %v333_v16 = vmul.f32 %v332_v10, %v1289_v56  ;;  %v485_v30 = vstv %s1389_s12  ;;  %s1624_s12 = sld [smem:[#allocation2 + $0x27]] }
 0x1f5   :  { %346 = vrot.lane.b32.xlu1 %v1291_v57, %s936_s27  ;;  %344 = vrot.lane.b32.xlu0 %v1289_v56, %s936_s27 }
 0x1f9   :  { %355 = vrot.lane.b32.xlu1 %v1291_v57, %s938_s0  ;;  %353 = vrot.lane.b32.xlu0 %v1289_v56, %s938_s0  ;;  %s949_s0 = smov 110  }
 0x1fd   :  { %364 = vrot.lane.b32.xlu1 %v1291_v57, %s940_s30  ;;  %362 = vrot.lane.b32.xlu0 %v1289_v56, %s940_s30 }
 0x201   :  { %375 = vrot.lane.b32.xlu1 %v1291_v57, %s942_s5  ;;  %373 = vrot.lane.b32.xlu0 %v1289_v56, %s942_s5  ;;  %s950_s5 = smov 108  }
 0x205   :  { %386 = vrot.lane.b32.xlu1 %v1291_v57, %s944_s7  ;;  %384 = vrot.lane.b32.xlu0 %v1289_v56, %s944_s7 }
 0x209   :  { %397 = vrot.lane.b32.xlu1 %v1291_v57, %s946_s9  ;;  %395 = vrot.lane.b32.xlu0 %v1289_v56, %s946_s9  ;;  %s951_s9 = smov 106  }
 0x20d   :  { %408 = vrot.lane.b32.xlu1 %v1291_v57, %s948_s22  ;;  %406 = vrot.lane.b32.xlu0 %v1289_v56, %s948_s22 }
 0x211   :  { %420 = vrot.lane.b32.xlu1 %v1291_v57, %s949_s0  ;;  %418 = vrot.lane.b32.xlu0 %v1289_v56, %s949_s0 }
 0x215   :  { %432 = vrot.lane.b32.xlu1 %v1291_v57, %s950_s5  ;;  %430 = vrot.lane.b32.xlu0 %v1289_v56, %s950_s5 }
 0x219   :  { %444 = vrot.lane.b32.xlu1 %v1291_v57, %s951_s9  ;;  %442 = vrot.lane.b32.xlu0 %v1289_v56, %s951_s9 }
 0x21d   :  { %456 = vrot.lane.b32.xlu1 %v1291_v57, %s952_s17  ;;  %454 = vrot.lane.b32.xlu0 %v1289_v56, %s952_s17 }
 0x221   :  { %468 = vrot.lane.b32.xlu1 %v1291_v57, %s953_s18  ;;  %466 = vrot.lane.b32.xlu0 %v1289_v56, %s953_s18 }
 0x225   :  { %480 = vrot.lane.b32.xlu1 %v1291_v57, %s954_s19  ;;  %478 = vrot.lane.b32.xlu0 %v1289_v56, %s954_s19 }
 0x229   :  { %492 = vrot.lane.b32.xlu1 %v1291_v57, %s955_s20  ;;  %490 = vrot.lane.b32.xlu0 %v1289_v56, %s955_s20 }
 0x263   :  { %v1345_v58 = vpop.permute.xlu1 %337  ;;  %v1347_v59 = vpop.permute.xlu0 %335 }
 0x264   :  { %v339_v21 = vsel %vm115_vm0, %v1347_v59, %v1345_v58  ;;  %v340_v22 = vsel %vm115_vm0, %v1345_v58, %v1347_v59  ;;  %vm458_vm0 = vcmp.lt.s32.totalorder %v1096_v17, 104 }
 0x265   :  { %v342_v56 = vmul.f32 %v341_v12, %v339_v21  ;;  %v343_v57 = vmul.f32 %v341_v12, %v340_v22 }
 0x267   :  { %v1349_v60 = vpop.permute.xlu1 %346  ;;  %v1351_v61 = vpop.permute.xlu0 %344 }
 0x268   :  { %v348_v33 = vsel %vm135_vm3, %v1351_v61, %v1349_v60  ;;  %v349_v34 = vsel %vm135_vm3, %v1349_v60, %v1351_v61 }
 0x26b   :  { %v1353_v62 = vpop.permute.xlu1 %355  ;;  %v1355_v38 = vpop.permute.xlu0 %353 }
 0x26c   :  { %v357_v53 = vsel %vm159_vm5, %v1355_v38, %v1353_v62  ;;  %v358_v54 = vsel %vm159_vm5, %v1353_v62, %v1355_v38  ;;  %vm511_vm5 = vcmp.eq.s32.totalorder %v509_v43, 0 }
 0x26d   :  { %vm515_vm2 = vmand %vm511_vm5, %vm513_vm15 }
 0x26f   :  { %v365_v63 = vpop.permute.xlu1 %364  ;;  %v363_v0 = vpop.permute.xlu0 %362 }
 0x270   :  { %v366_v32 = vsel %vm183_vm7, %v363_v0, %v365_v63  ;;  %v367_v18 = vsel %vm183_vm7, %v365_v63, %v363_v0  ;;  %v351_v63 = vmul.f32 %v350_v13, %v348_v33  ;;  %v352_v0 = vmul.f32 %v350_v13, %v349_v34 }
 0x271   :  { %v369_v50 = vmul.f32 %v368_v15, %v366_v32  ;;  %v370_v51 = vmul.f32 %v368_v15, %v367_v18 }
 0x273   :  { %v376_v1 = vpop.permute.xlu1 %375  ;;  %v374_v2 = vpop.permute.xlu0 %373 }
 0x274   :  { %v377_v44 = vsel %vm207_vm9, %v374_v2, %v376_v1  ;;  %v378_v47 = vsel %vm207_vm9, %v376_v1, %v374_v2  ;;  %vm482_vm9 = vcmp.lt.s32.totalorder %v1096_v17, 100 }
 0x275   :  { %v380_v55 = vmul.f32 %v379_v6, %v377_v44  ;;  %v381_v37 = vmul.f32 %v379_v6, %v378_v47 }
 0x277   :  { %v387_v3 = vpop.permute.xlu1 %386  ;;  %v385_v4 = vpop.permute.xlu0 %384  ;;  %v382_v62 = vadd.f32 %v380_v55, %v342_v56  ;;  %v383_v38 = vadd.f32 %v381_v37, %v343_v57 }
 0x278   :  { %v388_v35 = vsel %vm231_vm12, %v385_v4, %v387_v3  ;;  %v389_v49 = vsel %vm231_vm12, %v387_v3, %v385_v4  ;;  %v360_v3 = vmul.f32 %v359_v14, %v357_v53  ;;  %v361_v4 = vmul.f32 %v359_v14, %v358_v54 }
 0x279   :  { %v391_v58 = vmul.f32 %v390_v7, %v388_v35  ;;  %v392_v59 = vmul.f32 %v390_v7, %v389_v49 }
 0x27b   :  { %v398_v5 = vpop.permute.xlu1 %397  ;;  %v396_v8 = vpop.permute.xlu0 %395  ;;  %v393_v13 = vadd.f32 %v391_v58, %v351_v63  ;;  %v394_v14 = vadd.f32 %v392_v59, %v352_v0 }
 0x27c   :  { %v399_v36 = vsel %vm255_vm13, %v396_v8, %v398_v5  ;;  %v400_v52 = vsel %vm255_vm13, %v398_v5, %v396_v8  ;;  %v371_v5 = vadd.f32 %v369_v50, %v333_v16  ;;  %v372_v8 = vadd.f32 %v370_v51, %v334_v41 }
 0x27d   :  { %v402_v1 = vmul.f32 %v401_v20, %v399_v36  ;;  %v403_v2 = vmul.f32 %v401_v20, %v400_v52  ;;  %vm494_vm13 = vcmp.lt.s32.totalorder %v1096_v17, 98 }
 0x27f   :  { %v1383_v40 = vpop.permute.xlu1 %408  ;;  %v1385_v9 = vpop.permute.xlu0 %406  ;;  %v404_v7 = vadd.f32 %v402_v1, %v360_v3  ;;  %v405_v20 = vadd.f32 %v403_v2, %v361_v4 }
 0x280   :  { %v411_v10 = vsel %vm410_vm6, %v1385_v9, %v1383_v40  ;;  %v412_v12 = vsel %vm410_vm6, %v1383_v40, %v1385_v9 }
 0x281   :  { %v414_v32 = vmul.f32 %v413_v23, %v411_v10 }
 0x283   :  { %v1394_v11 = vpop.permute.xlu1 %420  ;;  %v1396_v39 = vpop.permute.xlu0 %418  ;;  %v416_v49 = vadd.f32 %v414_v32, %v371_v5 }
 0x284   :  { %v423_v41 = vsel %vm422_vm8, %v1396_v39, %v1394_v11  ;;  %v424_v15 = vsel %vm422_vm8, %v1394_v11, %v1396_v39  ;;  %v415_v11 = vmul.f32 %v413_v23, %v412_v12  ;;  %vm649_vm8 = vcmp.lt.s32.totalorder %v1096_v17, 92 }
 0x285   :  { %v426_v21 = vmul.f32 %v425_v25, %v423_v41  ;;  %v427_v22 = vmul.f32 %v425_v25, %v424_v15 }
 0x286   :  { %v417_v50 = vadd.f32 %v415_v11, %v372_v8 }
 0x287   :  { %v1409_v24 = vpop.permute.xlu1 %432  ;;  %v1411_v42 = vpop.permute.xlu0 %430  ;;  %v428_v52 = vadd.f32 %v426_v21, %v382_v62  ;;  %v429_v53 = vadd.f32 %v427_v22, %v383_v38 }
 0x288   :  { %v435_v40 = vsel %vm434_vm10, %v1411_v42, %v1409_v24  ;;  %v436_v9 = vsel %vm434_vm10, %v1409_v24, %v1411_v42 }
 0x289   :  { %v438_v23 = vmul.f32 %v437_v26, %v435_v40  ;;  %v439_v44 = vmul.f32 %v437_v26, %v436_v9 }
 0x28b   :  { %v445_v45 = vpop.permute.xlu1 %444  ;;  %v443_v48 = vpop.permute.xlu0 %442  ;;  %v440_v55 = vadd.f32 %v438_v23, %v393_v13  ;;  %v441_v37 = vadd.f32 %v439_v44, %v394_v14 }
 0x28c   :  { %v447_v39 = vsel %vm446_vm11, %v443_v48, %v445_v45  ;;  %v448_v18 = vsel %vm446_vm11, %v445_v45, %v443_v48  ;;  %vm661_vm11 = vcmp.lt.s32.totalorder %v1096_v17, 88 }
 0x28d   :  { %v450_v33 = vmul.f32 %v449_v27, %v447_v39  ;;  %v451_v34 = vmul.f32 %v449_v27, %v448_v18 }
 0x28f   :  { %v457_v60 = vpop.permute.xlu1 %456  ;;  %v455_v61 = vpop.permute.xlu0 %454 }
 0x290   :  { %v459_v47 = vsel %vm458_vm0, %v455_v61, %v457_v60  ;;  %v460_v45 = vsel %vm458_vm0, %v457_v60, %v455_v61  ;;  %v452_v60 = vadd.f32 %v450_v33, %v404_v7  ;;  %v453_v61 = vadd.f32 %v451_v34, %v405_v20 }
 0x291   :  { %v462_v54 = vmul.f32 %v461_v29, %v459_v47  ;;  %v463_v27 = vmul.f32 %v461_v29, %v460_v45 }
 0x293   :  { %v469_v16 = vpop.permute.xlu1 %468  ;;  %v467_v6 = vpop.permute.xlu0 %466  ;;  %v464_v3 = vadd.f32 %v462_v54, %v416_v49  ;;  %v465_v4 = vadd.f32 %v463_v27, %v417_v50 }
 0x294   :  { %v471_v24 = vsel %vm470_vm14, %v467_v6, %v469_v16  ;;  %v472_v42 = vsel %vm470_vm14, %v469_v16, %v467_v6  ;;  %vm673_vm14 = vcmp.lt.s32.totalorder %v1096_v17, 84 }
 0x295   :  { %v474_v51 = vmul.f32 %v473_v46, %v471_v24  ;;  %v475_v36 = vmul.f32 %v473_v46, %v472_v42 }
 0x297   :  { %v481_v25 = vpop.permute.xlu1 %480  ;;  %v479_v48 = vpop.permute.xlu0 %478  ;;  %v476_v0 = vadd.f32 %v474_v51, %v428_v52  ;;  %v477_v1 = vadd.f32 %v475_v36, %v429_v53 }
 0x298   :  { %v483_v35 = vsel %vm482_vm9, %v479_v48, %v481_v25  ;;  %v484_v26 = vsel %vm482_vm9, %v481_v25, %v479_v48 }
 0x299   :  { %v486_v56 = vmul.f32 %v485_v30, %v483_v35  ;;  %v487_v57 = vmul.f32 %v485_v30, %v484_v26  ;;  %v502_v38 = vadd.f32 %v476_v0, %v464_v3  ;;  %v503_v10 = vadd.f32 %v477_v1, %v465_v4 }
 0x29a   :  { %v559_v0 = vstv %s1610_s28  ;;  %v577_v3 = vstv %s1614_s4  ;;  %v586_v4 = vstv %s1616_s6 }
 0x29b   :  { %v493_v58 = vpop.permute.xlu1 %492  ;;  %v491_v59 = vpop.permute.xlu0 %490  ;;  %v488_v30 = vadd.f32 %v486_v56, %v440_v55  ;;  %v489_v5 = vadd.f32 %v487_v57, %v441_v37 }
 0x29c   :  { %v495_v46 = vsel %vm494_vm13, %v491_v59, %v493_v58  ;;  %v496_v63 = vsel %vm494_vm13, %v493_v58, %v491_v59 }
 0x29d   :  { %v498_v29 = vmul.f32 %v497_v31, %v495_v46  ;;  %v499_v2 = vmul.f32 %v497_v31, %v496_v63 }
 0x29f   :  { %v500_v8 = vadd.f32 %v498_v29, %v452_v60  ;;  %v501_v62 = vadd.f32 %v499_v2, %v453_v61  ;;  %v568_v2 = vstv %s1612_s29 }
 0x2a1   :  { %v504_v12 = vadd.f32 %v500_v8, %v488_v30  ;;  %v505_v13 = vadd.f32 %v501_v62, %v489_v5  ;;  %v595_v5 = vstv %s1618_s8  ;;  %v606_v62 = vstv %s1620_s10 }
 0x2a3   :  { %v506_v31 = vadd.f32 %v504_v12, %v502_v38  ;;  %v507_v14 = vadd.f32 %v505_v13, %v503_v10  ;;  %v617_v38 = vstv %s1622_s11  ;;  %v628_v10 = vstv %s1624_s12 }
 0x2a4   :  { %v640_v12 = vstv %s1626_s13 }
 0x2a5   :  { %v516_v41 = vsel %vm510_vm1, %v506_v31, 0.0  ;;  %v517_v15 = vsel %vm515_vm2, %v507_v14, 0.0 }
 0x2a6   :  { %v518_v16 = vadd.f32 %v517_v15, %v516_v41  ;;  %v528_v43 = vmul.f32 %v516_v41, %v516_v41  ;;  %v529_v6 = vmul.f32 %v517_v15, %v517_v15 }
 0x2a8   :  { %519 = vadd.xlane.f32.xlu0 %v518_v16  ;;  %v530_v7 = vadd.f32 %v529_v6, %v528_v43 }
 0x2aa   :  { %531 = vadd.xlane.f32.xlu1 %v530_v7 }
 0x331   :  { %v520_v20 = vpop.xlane.xlu0 %519 }
 0x332   :  { %v521_v40 = vrot.slane %v520_v20, 4 }
 0x333   :  { %v532_v9 = vpop.xlane.xlu1 %531 }
 0x334   :  { %v522_v32 = vadd.f32 %v521_v40, %v520_v20  ;;  %v533_v11 = vrot.slane %v532_v9, 4 }
 0x336   :  { %v523_v39 = vrot.slane %v522_v32, 2  ;;  %v534_v18 = vadd.f32 %v533_v11, %v532_v9  ;;  %v735_v9 = vand.u32 7, %v1096_v17 }
 0x338   :  { %v535_v21 = vrot.slane %v534_v18, 2  ;;  %v524_v19 = vadd.f32 %v523_v39, %v522_v32  ;;  %v736_v32 = vand.u32 7, %v1126_v28 }
 0x33a   :  { %v525_v22 = vrot.slane %v524_v19, 1  ;;  %v536_v24 = vadd.f32 %v535_v21, %v534_v18 }
 0x33c   :  { %v526_v42 = vadd.f32 %v525_v22, %v524_v19  ;;  %v537_v23 = vrot.slane %v536_v24, 1 }
 0x33e   :  { %852 = vpush %v526_v42  ;;  %v538_v44 = vadd.f32 %v537_v23, %v536_v24 }
 0x340   :  { %854 = vpush %v538_v44 }
 0x36f   :  { %s853_s14 = spop %852 }
 0x370   :  { %s540_s15 = smul.f32 0.0023584906, %s853_s14  ;;  %s1628_s14 = sld [smem:[#allocation2 + $0x29]] }
 0x371   :  { %s855_s16 = spop %854 }
 0x372   :  { %s542_s0 = smul.f32 %s540_s15, %s540_s15 }
 0x373   :  { %s541_s9 = smul.f32 0.0023584906, %s855_s16  ;;  %s1632_s16 = sld [smem:[#allocation2 + $0x2b]] }
 0x375   :  { %s543_s18 = ssub.f32 %s541_s9, %s542_s0 }
 0x376   :  { %s1634_s0 = sld [smem:[#allocation2 + $0x2c]] }
 0x377   :  { %s544_s20 = sadd.f32 1e-05, %s543_s18 }
 0x378   :  { %s1640_s9 = sld [smem:[#allocation2 + $0x2d]] }
 0x379   :  { %v545_v47 = vstv %s544_s20  ;;  %s1642_s18 = sld [smem:[#allocation2 + $0x2e]]  ;;  %v676_v15 = vstv %s1632_s16 }
 0x37a   :  { %899 = vrsqrt.f32 %v545_v47  ;;  %s1644_s20 = sld [smem:[#allocation2 + $0x2f]] }
 0x37c   :  { %v688_v16 = vstv %s1634_s0 }
 0x37e   :  { %v700_v43 = vstv %s1640_s9 }
 0x37f   :  { %v712_v6 = vstv %s1642_s18 }
 0x380   :  { %v724_v7 = vstv %s1644_s20 }
 0x387   :  { %v900_v45 = vpop.eup %899 }
 0x388   :  { %856 = vpush %v900_v45 }
 0x3b9   :  { %s857_s21 = spop %856 }
 0x3ba   :  { %s548_s23 = smul.f32 %s857_s21, %s841_s1 }
 0x3bc   :  { %s549_s24 = smul.f32 %s548_s23, %s540_s15  ;;  %v551_v25 = vstv %s548_s23  ;;  %s1630_s15 = sld [smem:[#allocation2 + $0x2a]] }
 0x3bd   :  { %v552_v48 = vmul.f32 %v551_v25, %v506_v31  ;;  %v553_v33 = vmul.f32 %v551_v25, %v507_v14  ;;  %v652_v14 = vstv %s1628_s14 }
 0x3be   :  { %s550_s25 = ssub.f32 %s844_s2, %s549_s24 }
 0x3c0   :  { %v554_v34 = vstv %s550_s25 }
 0x3c1   :  { %v555_v35 = vadd.f32 %v554_v34, %v552_v48  ;;  %v556_v26 = vadd.f32 %v554_v34, %v553_v33 }
 0x3c2   :  { %v664_v41 = vstv %s1630_s15 }
 0x3c3   :  { %v1550_v49 = vmax.f32 %v555_v35, 0.0  ;;  %v1552_v50 = vmax.f32 %v556_v26, 0.0 }
 0x3c5   :  { %564 = vrot.lane.b32.xlu1 %v1552_v50, %s936_s27  ;;  %562 = vrot.lane.b32.xlu0 %v1550_v49, %s936_s27  ;;  %s956_s27 = smov 96   ;;  %v561_v30 = vmul.f32 %v559_v0, %v1552_v50  ;;  %v560_v8 = vmul.f32 %v559_v0, %v1550_v49 }
 0x3c9   :  { %573 = vrot.lane.b32.xlu1 %v1552_v50, %s940_s30  ;;  %571 = vrot.lane.b32.xlu0 %v1550_v49, %s940_s30  ;;  %s957_s30 = smov 92  }
 0x3cd   :  { %582 = vrot.lane.b32.xlu1 %v1552_v50, %s944_s7  ;;  %580 = vrot.lane.b32.xlu0 %v1550_v49, %s944_s7  ;;  %s958_s7 = smov 88  }
 0x3d1   :  { %591 = vrot.lane.b32.xlu1 %v1552_v50, %s948_s22  ;;  %589 = vrot.lane.b32.xlu0 %v1550_v49, %s948_s22  ;;  %s959_s22 = smov 84  }
 0x3d5   :  { %602 = vrot.lane.b32.xlu1 %v1552_v50, %s950_s5  ;;  %600 = vrot.lane.b32.xlu0 %v1550_v49, %s950_s5  ;;  %s960_s5 = smov 80  }
 0x3d9   :  { %613 = vrot.lane.b32.xlu1 %v1552_v50, %s952_s17  ;;  %611 = vrot.lane.b32.xlu0 %v1550_v49, %s952_s17  ;;  %s961_s17 = smov 76  }
 0x3dd   :  { %624 = vrot.lane.b32.xlu1 %v1552_v50, %s954_s19  ;;  %622 = vrot.lane.b32.xlu0 %v1550_v49, %s954_s19  ;;  %s962_s19 = smov 72  }
 0x3e1   :  { %635 = vrot.lane.b32.xlu1 %v1552_v50, %s956_s27  ;;  %633 = vrot.lane.b32.xlu0 %v1550_v49, %s956_s27 }
 0x3e5   :  { %647 = vrot.lane.b32.xlu1 %v1552_v50, %s957_s30  ;;  %645 = vrot.lane.b32.xlu0 %v1550_v49, %s957_s30  ;;  %s842_s30 = sld [smem:[#allocation4 + $0x4]] }
 0x3e9   :  { %659 = vrot.lane.b32.xlu1 %v1552_v50, %s958_s7  ;;  %657 = vrot.lane.b32.xlu0 %v1550_v49, %s958_s7  ;;  %s845_s7 = sld [smem:[#allocation4 + $0x5]] }
 0x3ed   :  { %671 = vrot.lane.b32.xlu1 %v1552_v50, %s959_s22  ;;  %669 = vrot.lane.b32.xlu0 %v1550_v49, %s959_s22 }
 0x3f1   :  { %683 = vrot.lane.b32.xlu1 %v1552_v50, %s960_s5  ;;  %681 = vrot.lane.b32.xlu0 %v1550_v49, %s960_s5 }
 0x3f5   :  { %695 = vrot.lane.b32.xlu1 %v1552_v50, %s961_s17  ;;  %693 = vrot.lane.b32.xlu0 %v1550_v49, %s961_s17 }
 0x3f9   :  { %707 = vrot.lane.b32.xlu1 %v1552_v50, %s962_s19  ;;  %705 = vrot.lane.b32.xlu0 %v1550_v49, %s962_s19 }
 0x3fd   :  { %719 = vrot.lane.b32.xlu1 %v1552_v50, %s963_s26  ;;  %717 = vrot.lane.b32.xlu0 %v1550_v49, %s963_s26 }
 0x437   :  { %v1598_v51 = vpop.permute.xlu1 %564  ;;  %v1600_v36 = vpop.permute.xlu0 %562 }
 0x438   :  { %v566_v11 = vsel %vm135_vm3, %v1600_v36, %v1598_v51  ;;  %v567_v39 = vsel %vm135_vm3, %v1598_v51, %v1600_v36  ;;  %vm685_vm3 = vcmp.lt.s32.totalorder %v1096_v17, 80 }
 0x439   :  { %v569_v49 = vmul.f32 %v568_v2, %v566_v11  ;;  %v570_v50 = vmul.f32 %v568_v2, %v567_v39 }
 0x43b   :  { %v1602_v52 = vpop.permute.xlu1 %573  ;;  %v1604_v53 = vpop.permute.xlu0 %571 }
 0x43c   :  { %v575_v24 = vsel %vm183_vm7, %v1604_v53, %v1602_v52  ;;  %v576_v42 = vsel %vm183_vm7, %v1602_v52, %v1604_v53  ;;  %vm721_vm7 = vcmp.lt.s32.totalorder %v1096_v17, 68 }
 0x43f   :  { %v1606_v54 = vpop.permute.xlu1 %582  ;;  %v1608_v27 = vpop.permute.xlu0 %580 }
 0x440   :  { %v584_v33 = vsel %vm231_vm12, %v1608_v27, %v1606_v54  ;;  %v585_v34 = vsel %vm231_vm12, %v1606_v54, %v1608_v27  ;;  %vm738_vm12 = vcmp.eq.s32.totalorder %v736_v32, 0 }
 0x443   :  { %v592_v55 = vpop.permute.xlu1 %591  ;;  %v590_v37 = vpop.permute.xlu0 %589 }
 0x444   :  { %v593_v20 = vsel %vm410_vm6, %v590_v37, %v592_v55  ;;  %v594_v40 = vsel %vm410_vm6, %v592_v55, %v590_v37  ;;  %vm697_vm6 = vcmp.lt.s32.totalorder %v1096_v17, 76  ;;  %v578_v55 = vmul.f32 %v577_v3, %v575_v24 }
 0x445   :  { %v596_v47 = vmul.f32 %v595_v5, %v593_v20  ;;  %v597_v45 = vmul.f32 %v595_v5, %v594_v40  ;;  %v579_v37 = vmul.f32 %v577_v3, %v576_v42 }
 0x447   :  { %v603_v56 = vpop.permute.xlu1 %602  ;;  %v601_v57 = vpop.permute.xlu0 %600 }
 0x448   :  { %v604_v18 = vsel %vm434_vm10, %v601_v57, %v603_v56  ;;  %v605_v21 = vsel %vm434_vm10, %v603_v56, %v601_v57  ;;  %vm709_vm10 = vcmp.lt.s32.totalorder %v1096_v17, 72 }
 0x449   :  { %v607_v35 = vmul.f32 %v606_v62, %v604_v18  ;;  %v608_v26 = vmul.f32 %v606_v62, %v605_v21 }
 0x44b   :  { %v614_v58 = vpop.permute.xlu1 %613  ;;  %v612_v59 = vpop.permute.xlu0 %611  ;;  %v609_v54 = vadd.f32 %v607_v35, %v569_v49  ;;  %v610_v27 = vadd.f32 %v608_v26, %v570_v50 }
 0x44c   :  { %v615_v23 = vsel %vm458_vm0, %v612_v59, %v614_v58  ;;  %v616_v44 = vsel %vm458_vm0, %v614_v58, %v612_v59  ;;  %v587_v58 = vmul.f32 %v586_v4, %v584_v33  ;;  %v588_v59 = vmul.f32 %v586_v4, %v585_v34 }
 0x44d   :  { %v618_v51 = vmul.f32 %v617_v38, %v615_v23  ;;  %v619_v36 = vmul.f32 %v617_v38, %v616_v44  ;;  %vm740_vm0 = vcmp.le.s32.totalorder %v1126_v28, 144 }
 0x44e   :  { %vm742_vm13 = vmand %vm738_vm12, %vm740_vm0 }
 0x44f   :  { %v625_v60 = vpop.permute.xlu1 %624  ;;  %v623_v61 = vpop.permute.xlu0 %622  ;;  %v620_v3 = vadd.f32 %v618_v51, %v578_v55  ;;  %v621_v4 = vadd.f32 %v619_v36, %v579_v37 }
 0x450   :  { %v626_v25 = vsel %vm482_vm9, %v623_v61, %v625_v60  ;;  %v627_v48 = vsel %vm482_vm9, %v625_v60, %v623_v61  ;;  %v598_v60 = vadd.f32 %v596_v47, %v560_v8  ;;  %v599_v61 = vadd.f32 %v597_v45, %v561_v30 }
 0x451   :  { %v629_v56 = vmul.f32 %v628_v10, %v626_v25  ;;  %v630_v57 = vmul.f32 %v628_v10, %v627_v48  ;;  %vm737_vm9 = vcmp.eq.s32.totalorder %v735_v9, 0 }
 0x453   :  { %v1636_v46 = vpop.permute.xlu1 %635  ;;  %v1638_v63 = vpop.permute.xlu0 %633  ;;  %v631_v38 = vadd.f32 %v629_v56, %v587_v58  ;;  %v632_v10 = vadd.f32 %v630_v57, %v588_v59 }
 0x454   :  { %v638_v0 = vsel %vm637_vm4, %v1638_v63, %v1636_v46  ;;  %v639_v2 = vsel %vm637_vm4, %v1636_v46, %v1638_v63 }
 0x455   :  { %v641_v20 = vmul.f32 %v640_v12, %v638_v0 }
 0x457   :  { %v1647_v1 = vpop.permute.xlu1 %647  ;;  %v1649_v29 = vpop.permute.xlu0 %645  ;;  %v643_v44 = vadd.f32 %v641_v20, %v598_v60 }
 0x458   :  { %v650_v30 = vsel %vm649_vm8, %v1649_v29, %v1647_v1  ;;  %v651_v5 = vsel %vm649_vm8, %v1647_v1, %v1649_v29  ;;  %v642_v1 = vmul.f32 %v640_v12, %v639_v2 }
 0x459   :  { %v653_v11 = vmul.f32 %v652_v14, %v650_v30  ;;  %v654_v39 = vmul.f32 %v652_v14, %v651_v5 }
 0x45a   :  { %v644_v47 = vadd.f32 %v642_v1, %v599_v61 }
 0x45b   :  { %v1662_v13 = vpop.permute.xlu1 %659  ;;  %v1664_v31 = vpop.permute.xlu0 %657  ;;  %v655_v48 = vadd.f32 %v653_v11, %v609_v54  ;;  %v656_v33 = vadd.f32 %v654_v39, %v610_v27 }
 0x45c   :  { %v662_v46 = vsel %vm661_vm11, %v1664_v31, %v1662_v13  ;;  %v663_v63 = vsel %vm661_vm11, %v1662_v13, %v1664_v31 }
 0x45d   :  { %v665_v12 = vmul.f32 %v664_v41, %v662_v46  ;;  %v666_v18 = vmul.f32 %v664_v41, %v663_v63 }
 0x45f   :  { %v672_v19 = vpop.permute.xlu1 %671  ;;  %v670_v22 = vpop.permute.xlu0 %669  ;;  %v667_v35 = vadd.f32 %v665_v12, %v620_v3  ;;  %v668_v26 = vadd.f32 %v666_v18, %v621_v4 }
 0x460   :  { %v674_v29 = vsel %vm673_vm14, %v670_v22, %v672_v19  ;;  %v675_v40 = vsel %vm673_vm14, %v672_v19, %v670_v22 }
 0x461   :  { %v677_v24 = vmul.f32 %v676_v15, %v674_v29  ;;  %v678_v42 = vmul.f32 %v676_v15, %v675_v40 }
 0x463   :  { %v684_v52 = vpop.permute.xlu1 %683  ;;  %v682_v53 = vpop.permute.xlu0 %681 }
 0x464   :  { %v686_v21 = vsel %vm685_vm3, %v682_v53, %v684_v52  ;;  %v687_v19 = vsel %vm685_vm3, %v684_v52, %v682_v53  ;;  %v679_v52 = vadd.f32 %v677_v24, %v631_v38  ;;  %v680_v53 = vadd.f32 %v678_v42, %v632_v10 }
 0x465   :  { %v689_v34 = vmul.f32 %v688_v16, %v686_v21  ;;  %v690_v15 = vmul.f32 %v688_v16, %v687_v19 }
 0x467   :  { %v696_v8 = vpop.permute.xlu1 %695  ;;  %v694_v62 = vpop.permute.xlu0 %693  ;;  %v691_v58 = vadd.f32 %v689_v34, %v643_v44  ;;  %v692_v59 = vadd.f32 %v690_v15, %v644_v47 }
 0x468   :  { %v698_v13 = vsel %vm697_vm6, %v694_v62, %v696_v8  ;;  %v699_v31 = vsel %vm697_vm6, %v696_v8, %v694_v62 }
 0x469   :  { %v701_v45 = vmul.f32 %v700_v43, %v698_v13  ;;  %v702_v25 = vmul.f32 %v700_v43, %v699_v31 }
 0x46b   :  { %v708_v14 = vpop.permute.xlu1 %707  ;;  %v706_v22 = vpop.permute.xlu0 %705  ;;  %v703_v37 = vadd.f32 %v701_v45, %v655_v48  ;;  %v704_v56 = vadd.f32 %v702_v25, %v656_v33 }
 0x46c   :  { %v710_v23 = vsel %vm709_vm10, %v706_v22, %v708_v14  ;;  %v711_v41 = vsel %vm709_vm10, %v708_v14, %v706_v22 }
 0x46d   :  { %v713_v49 = vmul.f32 %v712_v6, %v710_v23  ;;  %v714_v50 = vmul.f32 %v712_v6, %v711_v41  ;;  %v729_v27 = vadd.f32 %v703_v37, %v691_v58  ;;  %v730_v0 = vadd.f32 %v704_v56, %v692_v59 }
 0x46f   :  { %v720_v51 = vpop.permute.xlu1 %719  ;;  %v718_v36 = vpop.permute.xlu0 %717  ;;  %v715_v6 = vadd.f32 %v713_v49, %v667_v35  ;;  %v716_v60 = vadd.f32 %v714_v50, %v668_v26 }
 0x470   :  { %v722_v43 = vsel %vm721_vm7, %v718_v36, %v720_v51  ;;  %v723_v55 = vsel %vm721_vm7, %v720_v51, %v718_v36 }
 0x471   :  { %v725_v16 = vmul.f32 %v724_v7, %v722_v43  ;;  %v726_v57 = vmul.f32 %v724_v7, %v723_v55 }
 0x473   :  { %v727_v61 = vadd.f32 %v725_v16, %v679_v52  ;;  %v728_v54 = vadd.f32 %v726_v57, %v680_v53 }
 0x475   :  { %v731_v2 = vadd.f32 %v727_v61, %v715_v6  ;;  %v732_v3 = vadd.f32 %v728_v54, %v716_v60 }
 0x477   :  { %v733_v7 = vadd.f32 %v731_v2, %v729_v27  ;;  %v734_v4 = vadd.f32 %v732_v3, %v730_v0 }
 0x479   :  { %v743_v30 = vsel %vm737_vm9, %v733_v7, 0.0  ;;  %v744_v5 = vsel %vm742_vm13, %v734_v4, 0.0 }
 0x47a   :  { %v745_v8 = vadd.f32 %v744_v5, %v743_v30  ;;  %v755_v32 = vmul.f32 %v743_v30, %v743_v30  ;;  %v756_v62 = vmul.f32 %v744_v5, %v744_v5 }
 0x47c   :  { %746 = vadd.xlane.f32.xlu0 %v745_v8  ;;  %v757_v28 = vadd.f32 %v756_v62, %v755_v32 }
 0x47e   :  { %758 = vadd.xlane.f32.xlu1 %v757_v28 }
 0x505   :  { %v747_v38 = vpop.xlane.xlu0 %746 }
 0x506   :  { %v748_v10 = vrot.slane %v747_v38, 4 }
 0x507   :  { %v759_v46 = vpop.xlane.xlu1 %758 }
 0x508   :  { %v749_v63 = vadd.f32 %v748_v10, %v747_v38  ;;  %v760_v20 = vrot.slane %v759_v46, 4 }
 0x50a   :  { %v750_v1 = vrot.slane %v749_v63, 2  ;;  %v761_v29 = vadd.f32 %v760_v20, %v759_v46 }
 0x50c   :  { %v751_v17 = vadd.f32 %v750_v1, %v749_v63  ;;  %v762_v9 = vrot.slane %v761_v29, 2 }
 0x50e   :  { %v763_v40 = vadd.f32 %v762_v9, %v761_v29  ;;  %v752_v11 = vrot.slane %v751_v17, 1 }
 0x510   :  { %v753_v39 = vadd.f32 %v752_v11, %v751_v17  ;;  %v764_v13 = vrot.slane %v763_v40, 1 }
 0x512   :  { %858 = vpush %v753_v39  ;;  %v765_v31 = vadd.f32 %v764_v13, %v763_v40 }
 0x514   :  { %860 = vpush %v765_v31 }
 0x543   :  { %s859_s1 = spop %858 }
 0x544   :  { %s767_s2 = smul.f32 0.0065789474, %s859_s1 }
 0x545   :  { %s861_s21 = spop %860 }
 0x546   :  { %s769_s23 = smul.f32 %s767_s2, %s767_s2 }
 0x547   :  { %s768_s24 = smul.f32 0.0065789474, %s861_s21 }
 0x549   :  { %s770_s25 = ssub.f32 %s768_s24, %s769_s23 }
 0x54b   :  { %s771_s27 = sadd.f32 1e-05, %s770_s25 }
 0x54d   :  { %v772_v12 = vstv %s771_s27 }
 0x54e   :  { %901 = vrsqrt.f32 %v772_v12 }
 0x55b   :  { %v902_v18 = vpop.eup %901 }
 0x55c   :  { %862 = vpush %v902_v18 }
 0x58d   :  { %s863_s22 = spop %862 }
 0x58e   :  { %s775_s5 = smul.f32 %s863_s22, %s842_s30 }
 0x590   :  { %s776_s17 = smul.f32 %s775_s5, %s767_s2  ;;  %v778_v21 = vstv %s775_s5 }
 0x591   :  { %v779_v19 = vmul.f32 %v778_v21, %v733_v7  ;;  %v780_v14 = vmul.f32 %v778_v21, %v734_v4 }
 0x592   :  { %s777_s19 = ssub.f32 %s845_s7, %s776_s17 }
 0x594   :  { %v781_v22 = vstv %s777_s19 }
 0x595   :  { %v782_v24 = vadd.f32 %v781_v22, %v779_v19  ;;  %v783_v42 = vadd.f32 %v781_v22, %v780_v14 }
 0x597   :  { %v784_v23 = vmax.f32 %v782_v24, 0.0  ;;  %v785_v41 = vmax.f32 %v783_v42, 0.0 }
 0x599   :  { %786 = vst [vmem:[%s1812_s3] sm:$0xff] %v784_v23  ;;  %787 = vst [vmem:[%s1812_s3 + $0x8] sm:$0xff] %v785_v41 }
 0x59a   :  { %792 = vsyncpa [#allocation3], 1 }
 0x59b   :  { %793 = vsyncpa [#allocation5], 1 }

</bundles_post_ra>
